<compile_context>
chip_gen: v6e
topology: v6e:2x2x1
jax: 0.10.0
libtpu: 0.0.40
codegen_flags: <defaults>
</compile_context>

<pallas_src>
import math

import jax
import jax.numpy as jnp
from jax.experimental import pallas as pl
from jax.experimental.pallas import tpu as pltpu

TEMPERATURE = 1.5            # from model.generate(..., temperature=1.5)
MIN_P = 0.1                  # from model.generate(..., min_p=0.1)
LOG_MIN_P = math.log(MIN_P)
RMS_EPS = 1e-6
NEG_INF = -1e30              # f32-safe large negative


def _rmsnorm(v, g):
    ms = jnp.mean(v * v, axis=-1, keepdims=True)
    return v * jax.lax.rsqrt(ms + RMS_EPS) * g


# ----------------------------------------------------------------------------
# Kernel 1: fused decoder layer — KV-cache decode step for a single row.
#   grid = (F // tf,): SwiGLU weight tiles stream through VMEM; the attention
#   (+ cache read / in-place row update) runs once under pl.when(f == 0).
# ----------------------------------------------------------------------------
def decoder_step_kernel(cur_ref,                    # SMEM (1,) i32: row being decoded
                        x_ref,                      # (1, D) f32 embedding row
                        kv_in_ref,                  # (T, 2D) f32 KV cache (HBM, aliased)
                        wq_ref, wkv_ref, wo_ref,    # bf16 attention weights (resident)
                        w13_ref,                    # (D, 2*tf) bf16 gate|up tile (streamed)
                        w2_ref,                     # (tf, D) bf16 down tile (streamed)
                        g1_ref, g2_ref, g3_ref,     # (1, D) f32 RMSNorm gains
                        y_ref,                      # out: (1, D) f32
                        kv_out_ref,                 # out: (T, 2D) f32 KV cache (HBM, aliased)
                        kv_vmem,                    # scratch (T, 2D) f32
                        x2_s, h2_s, acc_s,          # scratch (1, D) f32 / bf16 / f32
                        sem):                       # DMA semaphores (2,)
    f = pl.program_id(0)
    nf = pl.num_programs(0)
    D = x_ref.shape[1]
    tf = w13_ref.shape[-1] // 2

    @pl.when(f == 0)
    def _attention():
        cur = cur_ref[0]
        # Pull the whole KV cache HBM -> VMEM while the Q / new-K,V matvecs run.
        load = pltpu.make_async_copy(kv_in_ref, kv_vmem, sem.at[0])
        load.start()

        xr = x_ref[...]                                            # (1, D) f32
        hr = _rmsnorm(xr, g1_ref[...]).astype(jnp.bfloat16)
        q = jnp.dot(hr, wq_ref[...], preferred_element_type=jnp.float32)        # (1, D)
        kv_new = jnp.dot(hr, wkv_ref[...], preferred_element_type=jnp.float32)  # (1, 2D)

        load.wait()
        # Insert the new row into the VMEM copy and write just that row back to
        # the (aliased) HBM cache: in-place KV-cache update, no recompute.
        kv_vmem[pl.ds(cur, 1), :] = kv_new
        store = pltpu.make_async_copy(kv_vmem.at[pl.ds(cur, 1), :],
                                      kv_out_ref.at[pl.ds(cur, 1), :],
                                      sem.at[1])
        store.start()

        # TODO(synk): bf16/fp8 cache halves the per-token cache read at real shapes.
        k = kv_vmem[:, :D].astype(jnp.bfloat16)                    # (T, D)
        v = kv_vmem[:, D:].astype(jnp.bfloat16)                    # (T, D)
        s = jax.lax.dot_general(q.astype(jnp.bfloat16), k,
                                (((1,), (1,)), ((), ())),
                                preferred_element_type=jnp.float32)
        s = s * (1.0 / math.sqrt(D))                               # (1, T)
        col = jax.lax.broadcasted_iota(jnp.int32, s.shape, 1)
        s = jnp.where(col <= cur, s, NEG_INF)                      # causal mask
        m = jnp.max(s, axis=-1, keepdims=True)
        e = jnp.exp(s - m)
        p = e * pl.reciprocal(jnp.sum(e, axis=-1, keepdims=True), approx=True)
        o = jnp.dot(p.astype(jnp.bfloat16), v, preferred_element_type=jnp.float32)
        x2 = xr + jnp.dot(o.astype(jnp.bfloat16), wo_ref[...],
                          preferred_element_type=jnp.float32)      # (1, D) f32
        x2_s[...] = x2
        h2_s[...] = _rmsnorm(x2, g2_ref[...]).astype(jnp.bfloat16)  # bf16 cast once
        acc_s[...] = jnp.zeros_like(acc_s)
        store.wait()

    # SwiGLU MLP: one (gate|up, down) F-tile per grid step, f32 accumulator.
    h2 = h2_s[...]                                                 # (1, D) bf16
    gu = jnp.dot(h2, w13_ref[...], preferred_element_type=jnp.float32)  # (1, 2*tf)
    gate = gu[:, :tf]
    up = gu[:, tf:]
    act = (gate * jax.nn.sigmoid(gate) * up).astype(jnp.bfloat16)
    acc_s[...] += jnp.dot(act, w2_ref[...], preferred_element_type=jnp.float32)

    @pl.when(f == nf - 1)
    def _finish():
        y = x2_s[...] + acc_s[...]
        y_ref[...] = _rmsnorm(y, g3_ref[...])                      # (1, D) f32


def planner_decoder_step(x_row, cur, kv_cache, params, *, tf):
    """One decode step: x_row (1, D) f32, cur (1,) i32, kv_cache (T, 2D) f32.
    Returns (y_row (1, D) f32, updated kv_cache)."""
    T, twoD = kv_cache.shape
    D = x_row.shape[1]
    nf, _, tf2 = params["w13b"].shape
    assert tf2 == 2 * tf

    kernel = pl.pallas_call(
        decoder_step_kernel,
        out_shape=(jax.ShapeDtypeStruct((1, D), jnp.float32),
                   jax.ShapeDtypeStruct((T, twoD), kv_cache.dtype)),
        grid=(nf,),
        in_specs=[
            pl.BlockSpec(memory_space=pltpu.MemorySpace.SMEM),      # cur
            pl.BlockSpec((1, D), lambda f: (0, 0)),                 # x_row
            pl.BlockSpec(memory_space=pl.ANY),                      # KV cache (HBM)
            pl.BlockSpec((D, D), lambda f: (0, 0)),                 # wq (resident)
            pl.BlockSpec((D, 2 * D), lambda f: (0, 0)),             # wkv (resident)
            pl.BlockSpec((D, D), lambda f: (0, 0)),                 # wo (resident)
            pl.BlockSpec((None, D, 2 * tf), lambda f: (f, 0, 0)),   # w13 tile (streamed)
            pl.BlockSpec((tf, D), lambda f: (f, 0)),                # w2 tile (streamed)
            pl.BlockSpec((1, D), lambda f: (0, 0)),                 # g1
            pl.BlockSpec((1, D), lambda f: (0, 0)),                 # g2
            pl.BlockSpec((1, D), lambda f: (0, 0)),                 # g3
        ],
        out_specs=(pl.BlockSpec((1, D), lambda f: (0, 0)),          # y row (resident)
                   pl.BlockSpec(memory_space=pl.ANY)),              # KV cache out (HBM)
        scratch_shapes=[
            pltpu.VMEM((T, twoD), jnp.float32),                     # cache VMEM copy
            pltpu.VMEM((1, D), jnp.float32),                        # attention residual x2
            pltpu.VMEM((1, D), jnp.bfloat16),                       # h2 (cast once)
            pltpu.VMEM((1, D), jnp.float32),                        # MLP accumulator
            pltpu.SemaphoreType.DMA((2,)),
        ],
        input_output_aliases={2: 1},                                # cache updated in place
        compiler_params=pltpu.CompilerParams(
            dimension_semantics=("arbitrary",),
            # TODO(synk): re-derive per generation at real shapes
            # (v7x: 64 MiB physical VMEM vs 128 MiB on v5e/v6e).
            vmem_limit_bytes=32 * 1024 * 1024),
    )
    return kernel(cur, x_row, kv_cache,
                  params["wq"], params["wkv"], params["wo"],
                  params["w13b"], params["w2"],
                  params["g1"], params["g2"], params["g3"])


# ----------------------------------------------------------------------------
# Kernel 2: LM head — tile-major contiguous weight slabs, streamed logit tiles,
# resident running zmax; temperature applied in-kernel, min_p mask in wrapper.
# ----------------------------------------------------------------------------
def lm_head_kernel(y_ref, wlm_ref, z_ref, zmax_ref):
    """y_ref: (1, D) bf16; wlm_ref: (D, tv) bf16 slab; z_ref: (1, tv) streamed out;
       zmax_ref: (1, 1) resident running max of temperature-scaled logits."""
    j = pl.program_id(0)
    z = jnp.dot(y_ref[...], wlm_ref[...],
                preferred_element_type=jnp.float32) * (1.0 / TEMPERATURE)
    z_ref[...] = z

    @pl.when(j == 0)
    def _():
        zmax_ref[...] = jnp.full_like(zmax_ref, -jnp.inf)
    zmax_ref[...] = jnp.maximum(zmax_ref[...], jnp.max(z, keepdims=True))


def planner_lm_head(y_row_bf16, wlm_blocked):
    """y_row_bf16: (1, D) bf16, wlm_blocked: (nv, D, tv) bf16 -> ((1, V) logits, (1,1) zmax)."""
    nv, D, tv = wlm_blocked.shape
    V = nv * tv
    # TODO(synk): the real vocab (128256) is not divisible by 512/1024 — pad the
    # weight columns and force the padded logit tail to NEG_INF in the wrapper
    # before the zmax/min_p mask so padding can never be sampled.
    return pl.pallas_call(
        lm_head_kernel,
        out_shape=(jax.ShapeDtypeStruct((1, V), jnp.float32),
                   jax.ShapeDtypeStruct((1, 1), jnp.float32)),
        grid=(nv,),
        in_specs=[
            pl.BlockSpec((1, D), lambda j: (0, 0)),                 # activation row (resident)
            pl.BlockSpec((None, D, tv), lambda j: (j, 0, 0)),       # contiguous weight slab
        ],
        out_specs=(pl.BlockSpec((1, tv), lambda j: (0, j)),         # lane-dense logits tile
                   pl.BlockSpec((1, 1), lambda j: (0, 0))),         # resident running zmax
        compiler_params=pltpu.CompilerParams(
            # zmax accumulates across vocab tiles -> reduction axis.
            # TODO(synk): on v7x, split the vocab axis across the 2 TensorCores
            # (per-half zmax, global mask in the wrapper).
            dimension_semantics=("arbitrary",),
            vmem_limit_bytes=32 * 1024 * 1024),
    )(y_row_bf16, wlm_blocked)


# ----------------------------------------------------------------------------
# Parameters / driver.
# ----------------------------------------------------------------------------
def build_params(key, D, F, V, T, *, tf, tv):
    ks = jax.random.split(key, 9)

    def n(k, shape, s, dtype=jnp.bfloat16):
        return (jax.random.normal(k, shape, jnp.float32) * s).astype(dtype)

    nf, nv = F // tf, V // tv
    # TODO(synk): narrow the streamed weights (int8 on v5e/v6e, fp8 on v7x) to
    # further halve HBM traffic in this bandwidth-bound batch-1 decode.
    w1 = n(ks[2], (D, F), 0.05)          # gate proj
    w3 = n(ks[3], (D, F), 0.05)          # up proj
    # Pre-block gate|up into tile-major (nf, D, 2*tf): one contiguous DMA slab
    # per MLP grid step instead of D short strided rows.
    w13b = jnp.concatenate([w1.reshape(D, nf, tf).transpose(1, 0, 2),
                            w3.reshape(D, nf, tf).transpose(1, 0, 2)], axis=2)
    wlm = n(ks[5], (D, V), 0.05)
    wlmb = wlm.reshape(D, nv, tv).transpose(1, 0, 2)                # (nv, D, tv) tile-major
    return {
        "wq":  n(ks[0], (D, D), 0.05),
        "wkv": n(ks[1], (D, 2 * D), 0.05),
        "wo":  n(ks[4], (D, D), 0.05),
        "w13b": w13b,
        "w2":  n(ks[6], (F, D), 0.05),
        "wlmb": wlmb,
        "g1": jnp.ones((1, D), jnp.float32),
        "g2": jnp.ones((1, D), jnp.float32),
        "g3": jnp.ones((1, D), jnp.float32),
        "emb": n(ks[7], (V, D), 0.05, jnp.float32),
        "posemb": n(ks[8], (T, D), 0.02, jnp.float32),
    }


if __name__ == "__main__":
    # Small synthetic shapes standing in for the real LLM (vocab 128256, d 4096).
    D, F, V = 128, 256, 2048
    TF, TV = 128, 512                     # MLP F-tile / LM-head vocab tile
    prompt_len, max_new = 8, 8            # original uses max_new_tokens=128
    T = prompt_len + max_new              # KV-cache length

    root = jax.random.PRNGKey(0)
    k_params, k_prompt, k_sample = jax.random.split(root, 3)
    params = build_params(k_params, D, F, V, T, tf=TF, tv=TV)

    # TODO(synk): tokenizer.apply_chat_template / TextStreamer / batch_decode /
    # contractions.fix / ast.literal_eval post-processing have no tensor or
    # Pallas equivalent; the "query" is represented as synthetic prompt ids.
    prompt = jax.random.randint(k_prompt, (prompt_len,), 0, V, dtype=jnp.int32)
    tokens0 = jnp.zeros((T,), jnp.int32).at[:prompt_len].set(prompt)
    kv0 = jnp.zeros((T, 2 * D), jnp.float32)   # persistent KV cache (K|V concat)

    @jax.jit
    def generate(toks_init, kv_init):
        # Prefill + decode unified: step `pos` attends over cached rows <= pos
        # and fills row pos+1 (kept as the prompt token while pos+1 < prompt_len).
        # TODO(synk): a real prefill would process the whole prompt in one pass.
        def step(pos, carry):
            toks, kv = carry
            x_row = (params["emb"][toks[pos]] + params["posemb"][pos]).reshape(1, D)
            cur = jnp.full((1,), pos, jnp.int32)
            y_row, kv = planner_decoder_step(x_row, cur, kv, params, tf=TF)
            z, zmax = planner_lm_head(y_row.astype(jnp.bfloat16), params["wlmb"])
            # min_p on temperature-scaled logits:  keep z >= zmax + log(MIN_P).
            logits = jnp.where(z >= zmax + LOG_MIN_P, z, NEG_INF).reshape(-1)
            nxt = jax.random.categorical(jax.random.fold_in(k_sample, pos), logits)
            keep_prompt = (pos + 1) < prompt_len
            new_tok = jnp.where(keep_prompt, toks[pos + 1], nxt.astype(jnp.int32))
            toks = toks.at[pos + 1].set(new_tok)
            return toks, kv

        return jax.lax.fori_loop(0, T - 1, step, (toks_init, kv_init))

    tokens, kv_cache = generate(tokens0, kv0)
    tokens = jax.block_until_ready(tokens)
    print("KERNEL_OK")
</pallas_src>

<mosaic_0001>
module attributes {stable_mosaic.version = 11 : i64} {
  func.func @lm_head_kernel(%arg0: i32, %arg1: memref<1x128xbf16, #tpu.memory_space<vmem>>, %arg2: memref<1x128x512xbf16, #tpu.memory_space<vmem>>, %arg3: memref<1x512xf32, #tpu.memory_space<vmem>>, %arg4: memref<1x1xf32, #tpu.memory_space<vmem>>) attributes {dimension_semantics = [#tpu.dimension_semantics<arbitrary>], iteration_bounds = array<i64: 4>, scalar_prefetch = 0 : i64, scratch_operands = 0 : i64, tpu.core_type = #tpu.core_type<tc>, window_params = [{pipeline_mode = #tpu.pipeline_mode<synchronous>, transform_indices = @transform_0, window_bounds = array<i64: 1, 128>}, {transform_indices = @transform_1, window_bounds = array<i64: 1, 128, 512>}, {transform_indices = @transform_2, window_bounds = array<i64: 1, 512>}, {pipeline_mode = #tpu.pipeline_mode<synchronous>, transform_indices = @transform_3, window_bounds = array<i64: 1, 1>}]} {
    %c0 = arith.constant 0 : index
    %c0_0 = arith.constant 0 : index
    %0 = vector.load %arg1[%c0, %c0_0] : memref<1x128xbf16, #tpu.memory_space<vmem>>, vector<1x128xbf16>
    %c0_1 = arith.constant 0 : index
    %c0_2 = arith.constant 0 : index
    %c0_3 = arith.constant 0 : index
    %1 = vector.load %arg2[%c0_1, %c0_2, %c0_3] : memref<1x128x512xbf16, #tpu.memory_space<vmem>>, vector<1x128x512xbf16>
    %2 = vector.shape_cast %1 : vector<1x128x512xbf16> to vector<128x512xbf16>
    %cst = arith.constant dense<0.000000e+00> : vector<1x512xf32>
    %3 = tpu.matmul %0, %2, %cst {dimension_numbers = #tpu.dot_dimension_numbers<[1], [0], [0], [1], [0, 0, 1, 1], [], []>} : vector<1x128xbf16>, vector<128x512xbf16>, vector<1x512xf32> -> vector<1x512xf32>
    %cst_4 = arith.constant 0.666666686 : f32
    %4 = vector.broadcast %cst_4 : f32 to vector<1x512xf32>
    %5 = arith.mulf %3, %4 : vector<1x512xf32>
    %c0_5 = arith.constant 0 : index
    %c0_6 = arith.constant 0 : index
    %6 = vector.load %arg3[%c0_5, %c0_6] : memref<1x512xf32, #tpu.memory_space<vmem>>, vector<1x512xf32>
    tpu.vector_store %arg3[%c0_5, %c0_6], %5 {strides = array<i32>} : memref<1x512xf32, #tpu.memory_space<vmem>>, vector<1x512xf32>,
    %c0_i32 = arith.constant 0 : i32
    %7 = arith.cmpi eq, %arg0, %c0_i32 : i32
    %8 = arith.extui %7 : i1 to i32
    %c0_i32_7 = arith.constant 0 : i32
    %9 = arith.cmpi ne, %8, %c0_i32_7 : i32
    scf.if %9 {
      %cst_13 = arith.constant 0xFF800000 : f32
      %18 = vector.broadcast %cst_13 : f32 to vector<1x1xf32>
      %c0_14 = arith.constant 0 : index
      %c0_15 = arith.constant 0 : index
      %19 = vector.load %arg4[%c0_14, %c0_15] : memref<1x1xf32, #tpu.memory_space<vmem>>, vector<1x1xf32>
      tpu.vector_store %arg4[%c0_14, %c0_15], %18 {strides = array<i32>} : memref<1x1xf32, #tpu.memory_space<vmem>>, vector<1x1xf32>,
    } else {
    }
    %c0_8 = arith.constant 0 : index
    %c0_9 = arith.constant 0 : index
    %10 = vector.load %arg4[%c0_8, %c0_9] : memref<1x1xf32, #tpu.memory_space<vmem>>, vector<1x1xf32>
    %11 = vector.shape_cast %5 : vector<1x512xf32> to vector<1x1x512xf32>
    %cst_10 = arith.constant dense<0xFF800000> : vector<1xf32>
    %12 = vector.multi_reduction <maximumf>, %11, %cst_10 [1, 2] : vector<1x1x512xf32> to vector<1xf32>
    %13 = vector.shape_cast %12 : vector<1xf32> to vector<1x1x1xf32>
    %14 = vector.extract %13[0, 0, 0] : f32 from vector<1x1x1xf32>
    %15 = vector.broadcast %14 : f32 to vector<1x1xf32>
    %16 = arith.maximumf %10, %15 : vector<1x1xf32>
    %c0_11 = arith.constant 0 : index
    %c0_12 = arith.constant 0 : index
    %17 = vector.load %arg4[%c0_11, %c0_12] : memref<1x1xf32, #tpu.memory_space<vmem>>, vector<1x1xf32>
    tpu.vector_store %arg4[%c0_11, %c0_12], %16 {strides = array<i32>} : memref<1x1xf32, #tpu.memory_space<vmem>>, vector<1x1xf32>,
    return
  }
  func.func @transform_0(%arg0: i32) -> (i32, i32) {
    %c0_i32 = arith.constant 0 : i32
    %c0_i32_0 = arith.constant 0 : i32
    %c0_i32_1 = arith.constant 0 : i32
    return %c0_i32, %c0_i32_0 : i32, i32
  }
  func.func @transform_1(%arg0: i32) -> (i32, i32, i32) {
    %c0_i32 = arith.constant 0 : i32
    %c0_i32_0 = arith.constant 0 : i32
    %c0_i32_1 = arith.constant 0 : i32
    return %arg0, %c0_i32, %c0_i32_0 : i32, i32, i32
  }
  func.func @transform_2(%arg0: i32) -> (i32, i32) {
    %c0_i32 = arith.constant 0 : i32
    %c0_i32_0 = arith.constant 0 : i32
    return %c0_i32, %arg0 : i32, i32
  }
  func.func @transform_3(%arg0: i32) -> (i32, i32) {
    %c0_i32 = arith.constant 0 : i32
    %c0_i32_0 = arith.constant 0 : i32
    %c0_i32_1 = arith.constant 0 : i32
    return %c0_i32, %c0_i32_0 : i32, i32
  }
}

module attributes {stable_mosaic.version = 11 : i64} {
  func.func @decoder_step_kernel(%arg0: i32, %arg1: memref<1xi32, #tpu.memory_space<smem>>, %arg2: memref<1x128xf32, #tpu.memory_space<vmem>>, %arg3: memref<16x256xf32, #tpu.memory_space<any>>, %arg4: memref<128x128xbf16, #tpu.memory_space<vmem>>, %arg5: memref<128x256xbf16, #tpu.memory_space<vmem>>, %arg6: memref<128x128xbf16, #tpu.memory_space<vmem>>, %arg7: memref<1x128x256xbf16, #tpu.memory_space<vmem>>, %arg8: memref<128x128xbf16, #tpu.memory_space<vmem>>, %arg9: memref<1x128xf32, #tpu.memory_space<vmem>>, %arg10: memref<1x128xf32, #tpu.memory_space<vmem>>, %arg11: memref<1x128xf32, #tpu.memory_space<vmem>>, %arg12: memref<1x128xf32, #tpu.memory_space<vmem>>, %arg13: memref<16x256xf32, #tpu.memory_space<any>>, %arg14: memref<16x256xf32, #tpu.memory_space<vmem>>, %arg15: memref<1x128xf32, #tpu.memory_space<vmem>>, %arg16: memref<1x128xbf16, #tpu.memory_space<vmem>>, %arg17: memref<1x128xf32, #tpu.memory_space<vmem>>, %arg18: memref<2x!tpu.dma_semaphore, #tpu.memory_space<semaphore_mem>>) attributes {dimension_semantics = [#tpu.dimension_semantics<arbitrary>], iteration_bounds = array<i64: 2>, scalar_prefetch = 0 : i64, scratch_operands = 5 : i64, tpu.core_type = #tpu.core_type<tc>, window_params = [{transform_indices = @transform_0, window_bounds = array<i64: 1>}, {pipeline_mode = #tpu.pipeline_mode<synchronous>, transform_indices = @transform_1, window_bounds = array<i64: 1, 128>}, {}, {pipeline_mode = #tpu.pipeline_mode<synchronous>, transform_indices = @transform_3, window_bounds = array<i64: 128, 128>}, {pipeline_mode = #tpu.pipeline_mode<synchronous>, transform_indices = @transform_4, window_bounds = array<i64: 128, 256>}, {pipeline_mode = #tpu.pipeline_mode<synchronous>, transform_indices = @transform_5, window_bounds = array<i64: 128, 128>}, {transform_indices = @transform_6, window_bounds = array<i64: 1, 128, 256>}, {transform_indices = @transform_7, window_bounds = array<i64: 128, 128>}, {pipeline_mode = #tpu.pipeline_mode<synchronous>, transform_indices = @transform_8, window_bounds = array<i64: 1, 128>}, {pipeline_mode = #tpu.pipeline_mode<synchronous>, transform_indices = @transform_9, window_bounds = array<i64: 1, 128>}, {pipeline_mode = #tpu.pipeline_mode<synchronous>, transform_indices = @transform_10, window_bounds = array<i64: 1, 128>}, {pipeline_mode = #tpu.pipeline_mode<synchronous>, transform_indices = @transform_11, window_bounds = array<i64: 1, 128>}, {}]} {
    %c0_i32 = arith.constant 0 : i32
    %0 = arith.cmpi eq, %arg0, %c0_i32 : i32
    %1 = arith.extui %0 : i1 to i32
    %c0_i32_0 = arith.constant 0 : i32
    %2 = arith.cmpi ne, %1, %c0_i32_0 : i32
    scf.if %2 {
      %c0_14 = arith.constant 0 : index
      %25 = memref.load %arg1[%c0_14] : memref<1xi32, #tpu.memory_space<smem>>
      %c0_i32_15 = arith.constant 0 : i32
      %26 = tpu.memref_slice %arg18[%c0_i32_15] : memref<2x!tpu.dma_semaphore, #tpu.memory_space<semaphore_mem>> -> memref<1x!tpu.dma_semaphore, #tpu.memory_space<semaphore_mem>>
      %27 = tpu.memref_squeeze %26 : memref<1x!tpu.dma_semaphore, #tpu.memory_space<semaphore_mem>> -> memref<!tpu.dma_semaphore, #tpu.memory_space<semaphore_mem>>
      tpu.enqueue_dma source(%arg3 : memref<16x256xf32, #tpu.memory_space<any>>) target(%arg14 : memref<16x256xf32, #tpu.memory_space<vmem>>) target_semaphore(%27 : memref<!tpu.dma_semaphore, #tpu.memory_space<semaphore_mem>>)
      %c0_16 = arith.constant 0 : index
      %c0_17 = arith.constant 0 : index
      %28 = vector.load %arg2[%c0_16, %c0_17] : memref<1x128xf32, #tpu.memory_space<vmem>>, vector<1x128xf32>
      %c0_18 = arith.constant 0 : index
      %c0_19 = arith.constant 0 : index
      %29 = vector.load %arg9[%c0_18, %c0_19] : memref<1x128xf32, #tpu.memory_space<vmem>>, vector<1x128xf32>
      %30 = arith.mulf %28, %28 : vector<1x128xf32>
      %cst_20 = arith.constant dense<0.000000e+00> : vector<1xf32>
      %31 = vector.multi_reduction <add>, %30, %cst_20 [1] : vector<1x128xf32> to vector<1xf32>
      %32 = vector.shape_cast %31 : vector<1xf32> to vector<1x1xf32>
      %cst_21 = arith.constant 1.280000e+02 : f32
      %33 = vector.broadcast %cst_21 : f32 to vector<1x1xf32>
      %34 = arith.divf %32, %33 : vector<1x1xf32>
      %cst_22 = arith.constant 9.99999997E-7 : f32
      %35 = vector.broadcast %cst_22 : f32 to vector<1x1xf32>
      %36 = arith.addf %34, %35 : vector<1x1xf32>
      %37 = math.rsqrt %36 : vector<1x1xf32>
      %38 = vector.broadcast %37 : vector<1x1xf32> to vector<1x128xf32>
      %39 = arith.mulf %28, %38 : vector<1x128xf32>
      %40 = arith.mulf %39, %29 : vector<1x128xf32>
      %41 = arith.truncf %40 : vector<1x128xf32> to vector<1x128xbf16>
      %c0_23 = arith.constant 0 : index
      %c0_24 = arith.constant 0 : index
      %42 = vector.load %arg4[%c0_23, %c0_24] : memref<128x128xbf16, #tpu.memory_space<vmem>>, vector<128x128xbf16>
      %cst_25 = arith.constant dense<0.000000e+00> : vector<1x128xf32>
      %43 = tpu.matmul %41, %42, %cst_25 {dimension_numbers = #tpu.dot_dimension_numbers<[1], [0], [0], [1], [0, 0, 1, 1], [], []>} : vector<1x128xbf16>, vector<128x128xbf16>, vector<1x128xf32> -> vector<1x128xf32>
      %c0_26 = arith.constant 0 : index
      %c0_27 = arith.constant 0 : index
      %44 = vector.load %arg5[%c0_26, %c0_27] : memref<128x256xbf16, #tpu.memory_space<vmem>>, vector<128x256xbf16>
      %cst_28 = arith.constant dense<0.000000e+00> : vector<1x256xf32>
      %45 = tpu.matmul %41, %44, %cst_28 {dimension_numbers = #tpu.dot_dimension_numbers<[1], [0], [0], [1], [0, 0, 1, 1], [], []>} : vector<1x128xbf16>, vector<128x256xbf16>, vector<1x256xf32> -> vector<1x256xf32>
      %c0_i32_29 = arith.constant 0 : i32
      %46 = tpu.memref_slice %arg18[%c0_i32_29] : memref<2x!tpu.dma_semaphore, #tpu.memory_space<semaphore_mem>> -> memref<1x!tpu.dma_semaphore, #tpu.memory_space<semaphore_mem>>
      %47 = tpu.memref_squeeze %46 : memref<1x!tpu.dma_semaphore, #tpu.memory_space<semaphore_mem>> -> memref<!tpu.dma_semaphore, #tpu.memory_space<semaphore_mem>>
      tpu.wait_dma2 semaphore(%47 : memref<!tpu.dma_semaphore, #tpu.memory_space<semaphore_mem>>) src(%arg3 : memref<16x256xf32, #tpu.memory_space<any>>) dst(%arg14 : memref<16x256xf32, #tpu.memory_space<vmem>>)
      %48 = arith.index_cast %25 : i32 to index
      %c0_30 = arith.constant 0 : index
      %49 = vector.load %arg14[%48, %c0_30] : memref<16x256xf32, #tpu.memory_space<vmem>>, vector<1x256xf32>
      tpu.vector_store %arg14[%48, %c0_30], %45 {strides = array<i32>} : memref<16x256xf32, #tpu.memory_space<vmem>>, vector<1x256xf32>,
      %c1_i32_31 = arith.constant 1 : i32
      %c0_i32_32 = arith.constant 0 : i32
      %50 = tpu.memref_slice %arg14[%25, %c0_i32_32] : memref<16x256xf32, #tpu.memory_space<vmem>> -> memref<1x256xf32, #tpu.memory_space<vmem>>
      %c0_i32_33 = arith.constant 0 : i32
      %51 = tpu.memref_slice %arg13[%25, %c0_i32_33] : memref<16x256xf32, #tpu.memory_space<any>> -> memref<1x256xf32, #tpu.memory_space<any>>
      %52 = tpu.memref_slice %arg18[%c1_i32_31] : memref<2x!tpu.dma_semaphore, #tpu.memory_space<semaphore_mem>> -> memref<1x!tpu.dma_semaphore, #tpu.memory_space<semaphore_mem>>
      %53 = tpu.memref_squeeze %52 : memref<1x!tpu.dma_semaphore, #tpu.memory_space<semaphore_mem>> -> memref<!tpu.dma_semaphore, #tpu.memory_space<semaphore_mem>>
      tpu.enqueue_dma source(%50 : memref<1x256xf32, #tpu.memory_space<vmem>>) target(%51 : memref<1x256xf32, #tpu.memory_space<any>>) target_semaphore(%53 : memref<!tpu.dma_semaphore, #tpu.memory_space<semaphore_mem>>)
      %c0_34 = arith.constant 0 : index
      %c0_35 = arith.constant 0 : index
      %54 = vector.load %arg14[%c0_34, %c0_35] : memref<16x256xf32, #tpu.memory_space<vmem>>, vector<16x128xf32>
      %55 = arith.truncf %54 : vector<16x128xf32> to vector<16x128xbf16>
      %c0_36 = arith.constant 0 : index
      %c128 = arith.constant 128 : index
      %56 = vector.load %arg14[%c0_36, %c128] : memref<16x256xf32, #tpu.memory_space<vmem>>, vector<16x128xf32>
      %57 = arith.truncf %56 : vector<16x128xf32> to vector<16x128xbf16>
      %58 = arith.truncf %43 : vector<1x128xf32> to vector<1x128xbf16>
      %cst_37 = arith.constant dense<0.000000e+00> : vector<1x16xf32>
      %59 = tpu.matmul %58, %55, %cst_37 {dimension_numbers = #tpu.dot_dimension_numbers<[1], [1], [0], [0], [0, 0, 1, 0], [], []>} : vector<1x128xbf16>, vector<16x128xbf16>, vector<1x16xf32> -> vector<1x16xf32>
      %cst_38 = arith.constant 0.0883883461 : f32
      %60 = vector.broadcast %cst_38 : f32 to vector<1x16xf32>
      %61 = arith.mulf %59, %60 : vector<1x16xf32>
      %62 = tpu.iota {dimensions = array<i32: 1>} : vector<1x16xi32>
      %63 = vector.broadcast %25 : i32 to vector<1x16xi32>
      %64 = arith.cmpi sle, %62, %63 : vector<1x16xi32>
      %cst_39 = arith.constant -1.000000e+30 : f32
      %65 = vector.broadcast %cst_39 : f32 to vector<1x16xf32>
      %66 = arith.select %64, %61, %65 : vector<1x16xi1>, vector<1x16xf32>
      %cst_40 = arith.constant dense<0xFF800000> : vector<1xf32>
      %67 = vector.multi_reduction <maximumf>, %66, %cst_40 [1] : vector<1x16xf32> to vector<1xf32>
      %68 = vector.shape_cast %67 : vector<1xf32> to vector<1x1xf32>
      %69 = vector.broadcast %68 : vector<1x1xf32> to vector<1x16xf32>
      %70 = arith.subf %66, %69 : vector<1x16xf32>
      %71 = math.exp %70 : vector<1x16xf32>
      %cst_41 = arith.constant dense<0.000000e+00> : vector<1xf32>
      %72 = vector.multi_reduction <add>, %71, %cst_41 [1] : vector<1x16xf32> to vector<1xf32>
      %73 = vector.shape_cast %72 : vector<1xf32> to vector<1x1xf32>
      %74 = tpu.reciprocal %73 {approx = true} : vector<1x1xf32> -> vector<1x1xf32>
      %75 = vector.broadcast %74 : vector<1x1xf32> to vector<1x16xf32>
      %76 = arith.mulf %71, %75 : vector<1x16xf32>
      %77 = arith.truncf %76 : vector<1x16xf32> to vector<1x16xbf16>
      %cst_42 = arith.constant dense<0.000000e+00> : vector<1x128xf32>
      %78 = tpu.matmul %77, %57, %cst_42 {dimension_numbers = #tpu.dot_dimension_numbers<[1], [0], [0], [1], [0, 0, 1, 1], [], []>} : vector<1x16xbf16>, vector<16x128xbf16>, vector<1x128xf32> -> vector<1x128xf32>
      %79 = arith.truncf %78 : vector<1x128xf32> to vector<1x128xbf16>
      %c0_43 = arith.constant 0 : index
      %c0_44 = arith.constant 0 : index
      %80 = vector.load %arg6[%c0_43, %c0_44] : memref<128x128xbf16, #tpu.memory_space<vmem>>, vector<128x128xbf16>
      %cst_45 = arith.constant dense<0.000000e+00> : vector<1x128xf32>
      %81 = tpu.matmul %79, %80, %cst_45 {dimension_numbers = #tpu.dot_dimension_numbers<[1], [0], [0], [1], [0, 0, 1, 1], [], []>} : vector<1x128xbf16>, vector<128x128xbf16>, vector<1x128xf32> -> vector<1x128xf32>
      %82 = arith.addf %28, %81 : vector<1x128xf32>
      %c0_46 = arith.constant 0 : index
      %c0_47 = arith.constant 0 : index
      %83 = vector.load %arg15[%c0_46, %c0_47] : memref<1x128xf32, #tpu.memory_space<vmem>>, vector<1x128xf32>
      tpu.vector_store %arg15[%c0_46, %c0_47], %82 {strides = array<i32>} : memref<1x128xf32, #tpu.memory_space<vmem>>, vector<1x128xf32>,
      %c0_48 = arith.constant 0 : index
      %c0_49 = arith.constant 0 : index
      %84 = vector.load %arg10[%c0_48, %c0_49] : memref<1x128xf32, #tpu.memory_space<vmem>>, vector<1x128xf32>
      %85 = arith.mulf %82, %82 : vector<1x128xf32>
      %cst_50 = arith.constant dense<0.000000e+00> : vector<1xf32>
      %86 = vector.multi_reduction <add>, %85, %cst_50 [1] : vector<1x128xf32> to vector<1xf32>
      %87 = vector.shape_cast %86 : vector<1xf32> to vector<1x1xf32>
      %cst_51 = arith.constant 1.280000e+02 : f32
      %88 = vector.broadcast %cst_51 : f32 to vector<1x1xf32>
      %89 = arith.divf %87, %88 : vector<1x1xf32>
      %cst_52 = arith.constant 9.99999997E-7 : f32
      %90 = vector.broadcast %cst_52 : f32 to vector<1x1xf32>
      %91 = arith.addf %89, %90 : vector<1x1xf32>
      %92 = math.rsqrt %91 : vector<1x1xf32>
      %93 = vector.broadcast %92 : vector<1x1xf32> to vector<1x128xf32>
      %94 = arith.mulf %82, %93 : vector<1x128xf32>
      %95 = arith.mulf %94, %84 : vector<1x128xf32>
      %96 = arith.truncf %95 : vector<1x128xf32> to vector<1x128xbf16>
      %c0_53 = arith.constant 0 : index
      %c0_54 = arith.constant 0 : index
      %97 = vector.load %arg16[%c0_53, %c0_54] : memref<1x128xbf16, #tpu.memory_space<vmem>>, vector<1x128xbf16>
      tpu.vector_store %arg16[%c0_53, %c0_54], %96 {strides = array<i32>} : memref<1x128xbf16, #tpu.memory_space<vmem>>, vector<1x128xbf16>,
      %cst_55 = arith.constant 0.000000e+00 : f32
      %98 = vector.broadcast %cst_55 : f32 to vector<1x128xf32>
      %c0_56 = arith.constant 0 : index
      %c0_57 = arith.constant 0 : index
      %99 = vector.load %arg17[%c0_56, %c0_57] : memref<1x128xf32, #tpu.memory_space<vmem>>, vector<1x128xf32>
      tpu.vector_store %arg17[%c0_56, %c0_57], %98 {strides = array<i32>} : memref<1x128xf32, #tpu.memory_space<vmem>>, vector<1x128xf32>,
      %c1_i32_58 = arith.constant 1 : i32
      %c0_i32_59 = arith.constant 0 : i32
      %100 = tpu.memref_slice %arg14[%25, %c0_i32_59] : memref<16x256xf32, #tpu.memory_space<vmem>> -> memref<1x256xf32, #tpu.memory_space<vmem>>
      %c0_i32_60 = arith.constant 0 : i32
      %101 = tpu.memref_slice %arg13[%25, %c0_i32_60] : memref<16x256xf32, #tpu.memory_space<any>> -> memref<1x256xf32, #tpu.memory_space<any>>
      %102 = tpu.memref_slice %arg18[%c1_i32_58] : memref<2x!tpu.dma_semaphore, #tpu.memory_space<semaphore_mem>> -> memref<1x!tpu.dma_semaphore, #tpu.memory_space<semaphore_mem>>
      %103 = tpu.memref_squeeze %102 : memref<1x!tpu.dma_semaphore, #tpu.memory_space<semaphore_mem>> -> memref<!tpu.dma_semaphore, #tpu.memory_space<semaphore_mem>>
      tpu.wait_dma2 semaphore(%103 : memref<!tpu.dma_semaphore, #tpu.memory_space<semaphore_mem>>) src(%100 : memref<1x256xf32, #tpu.memory_space<vmem>>) dst(%101 : memref<1x256xf32, #tpu.memory_space<any>>)
    } else {
    }
    %c0 = arith.constant 0 : index
    %c0_1 = arith.constant 0 : index
    %3 = vector.load %arg16[%c0, %c0_1] : memref<1x128xbf16, #tpu.memory_space<vmem>>, vector<1x128xbf16>
    %c0_2 = arith.constant 0 : index
    %c0_3 = arith.constant 0 : index
    %c0_4 = arith.constant 0 : index
    %4 = vector.load %arg7[%c0_2, %c0_3, %c0_4] : memref<1x128x256xbf16, #tpu.memory_space<vmem>>, vector<1x128x256xbf16>
    %5 = vector.shape_cast %4 : vector<1x128x256xbf16> to vector<128x256xbf16>
    %cst = arith.constant dense<0.000000e+00> : vector<1x256xf32>
    %6 = tpu.matmul %3, %5, %cst {dimension_numbers = #tpu.dot_dimension_numbers<[1], [0], [0], [1], [0, 0, 1, 1], [], []>} : vector<1x128xbf16>, vector<128x256xbf16>, vector<1x256xf32> -> vector<1x256xf32>
    %7 = vector.extract_strided_slice %6 {offsets = [0, 0], sizes = [1, 128], strides = [1, 1]} : vector<1x256xf32> to vector<1x128xf32>
    %8 = vector.extract_strided_slice %6 {offsets = [0, 128], sizes = [1, 128], strides = [1, 1]} : vector<1x256xf32> to vector<1x128xf32>
    %9 = arith.negf %7 : vector<1x128xf32>
    %10 = math.exp %9 : vector<1x128xf32>
    %cst_5 = arith.constant 1.000000e+00 : f32
    %11 = vector.broadcast %cst_5 : f32 to vector<1x128xf32>
    %12 = arith.addf %11, %10 : vector<1x128xf32>
    %13 = arith.divf %11, %12 : vector<1x128xf32>
    %14 = arith.mulf %7, %13 : vector<1x128xf32>
    %15 = arith.mulf %14, %8 : vector<1x128xf32>
    %16 = arith.truncf %15 : vector<1x128xf32> to vector<1x128xbf16>
    %c0_6 = arith.constant 0 : index
    %c0_7 = arith.constant 0 : index
    %17 = vector.load %arg17[%c0_6, %c0_7] : memref<1x128xf32, #tpu.memory_space<vmem>>, vector<1x128xf32>
    %c0_8 = arith.constant 0 : index
    %c0_9 = arith.constant 0 : index
    %18 = vector.load %arg8[%c0_8, %c0_9] : memref<128x128xbf16, #tpu.memory_space<vmem>>, vector<128x128xbf16>
    %cst_10 = arith.constant dense<0.000000e+00> : vector<1x128xf32>
    %19 = tpu.matmul %16, %18, %cst_10 {dimension_numbers = #tpu.dot_dimension_numbers<[1], [0], [0], [1], [0, 0, 1, 1], [], []>} : vector<1x128xbf16>, vector<128x128xbf16>, vector<1x128xf32> -> vector<1x128xf32>
    %20 = arith.addf %17, %19 : vector<1x128xf32>
    %c0_11 = arith.constant 0 : index
    %c0_12 = arith.constant 0 : index
    %21 = vector.load %arg17[%c0_11, %c0_12] : memref<1x128xf32, #tpu.memory_space<vmem>>, vector<1x128xf32>
    tpu.vector_store %arg17[%c0_11, %c0_12], %20 {strides = array<i32>} : memref<1x128xf32, #tpu.memory_space<vmem>>, vector<1x128xf32>,
    %c1_i32 = arith.constant 1 : i32
    %22 = arith.cmpi eq, %arg0, %c1_i32 : i32
    %23 = arith.extui %22 : i1 to i32
    %c0_i32_13 = arith.constant 0 : i32
    %24 = arith.cmpi ne, %23, %c0_i32_13 : i32
    scf.if %24 {
      %c0_14 = arith.constant 0 : index
      %c0_15 = arith.constant 0 : index
      %25 = vector.load %arg15[%c0_14, %c0_15] : memref<1x128xf32, #tpu.memory_space<vmem>>, vector<1x128xf32>
      %c0_16 = arith.constant 0 : index
      %c0_17 = arith.constant 0 : index
      %26 = vector.load %arg17[%c0_16, %c0_17] : memref<1x128xf32, #tpu.memory_space<vmem>>, vector<1x128xf32>
      %27 = arith.addf %25, %26 : vector<1x128xf32>
      %c0_18 = arith.constant 0 : index
      %c0_19 = arith.constant 0 : index
      %28 = vector.load %arg11[%c0_18, %c0_19] : memref<1x128xf32, #tpu.memory_space<vmem>>, vector<1x128xf32>
      %29 = arith.mulf %27, %27 : vector<1x128xf32>
      %cst_20 = arith.constant dense<0.000000e+00> : vector<1xf32>
      %30 = vector.multi_reduction <add>, %29, %cst_20 [1] : vector<1x128xf32> to vector<1xf32>
      %31 = vector.shape_cast %30 : vector<1xf32> to vector<1x1xf32>
      %cst_21 = arith.constant 1.280000e+02 : f32
      %32 = vector.broadcast %cst_21 : f32 to vector<1x1xf32>
      %33 = arith.divf %31, %32 : vector<1x1xf32>
      %cst_22 = arith.constant 9.99999997E-7 : f32
      %34 = vector.broadcast %cst_22 : f32 to vector<1x1xf32>
      %35 = arith.addf %33, %34 : vector<1x1xf32>
      %36 = math.rsqrt %35 : vector<1x1xf32>
      %37 = vector.broadcast %36 : vector<1x1xf32> to vector<1x128xf32>
      %38 = arith.mulf %27, %37 : vector<1x128xf32>
      %39 = arith.mulf %38, %28 : vector<1x128xf32>
      %c0_23 = arith.constant 0 : index
      %c0_24 = arith.constant 0 : index
      %40 = vector.load %arg12[%c0_23, %c0_24] : memref<1x128xf32, #tpu.memory_space<vmem>>, vector<1x128xf32>
      tpu.vector_store %arg12[%c0_23, %c0_24], %39 {strides = array<i32>} : memref<1x128xf32, #tpu.memory_space<vmem>>, vector<1x128xf32>,
    } else {
    }
    return
  }
  func.func @transform_0(%arg0: i32) -> i32 {
    %c0_i32 = arith.constant 0 : i32
    %c0_i32_0 = arith.constant 0 : i32
    return %c0_i32 : i32
  }
  func.func @transform_1(%arg0: i32) -> (i32, i32) {
    %c0_i32 = arith.constant 0 : i32
    %c0_i32_0 = arith.constant 0 : i32
    %c0_i32_1 = arith.constant 0 : i32
    return %c0_i32, %c0_i32_0 : i32, i32
  }
  func.func @transform_3(%arg0: i32) -> (i32, i32) {
    %c0_i32 = arith.constant 0 : i32
    %c0_i32_0 = arith.constant 0 : i32
    %c0_i32_1 = arith.constant 0 : i32
    return %c0_i32, %c0_i32_0 : i32, i32
  }
  func.func @transform_4(%arg0: i32) -> (i32, i32) {
    %c0_i32 = arith.constant 0 : i32
    %c0_i32_0 = arith.constant 0 : i32
    %c0_i32_1 = arith.constant 0 : i32
    return %c0_i32, %c0_i32_0 : i32, i32
  }
  func.func @transform_5(%arg0: i32) -> (i32, i32) {
    %c0_i32 = arith.constant 0 : i32
    %c0_i32_0 = arith.constant 0 : i32
    %c0_i32_1 = arith.constant 0 : i32
    return %c0_i32, %c0_i32_0 : i32, i32
  }
  func.func @transform_6(%arg0: i32) -> (i32, i32, i32) {
    %c0_i32 = arith.constant 0 : i32
    %c0_i32_0 = arith.constant 0 : i32
    %c0_i32_1 = arith.constant 0 : i32
    return %arg0, %c0_i32, %c0_i32_0 : i32, i32, i32
  }
  func.func @transform_7(%arg0: i32) -> (i32, i32) {
    %c0_i32 = arith.constant 0 : i32
    %c0_i32_0 = arith.constant 0 : i32
    return %arg0, %c0_i32 : i32, i32
  }
  func.func @transform_8(%arg0: i32) -> (i32, i32) {
    %c0_i32 = arith.constant 0 : i32
    %c0_i32_0 = arith.constant 0 : i32
    %c0_i32_1 = arith.constant 0 : i32
    return %c0_i32, %c0_i32_0 : i32, i32
  }
  func.func @transform_9(%arg0: i32) -> (i32, i32) {
    %c0_i32 = arith.constant 0 : i32
    %c0_i32_0 = arith.constant 0 : i32
    %c0_i32_1 = arith.constant 0 : i32
    return %c0_i32, %c0_i32_0 : i32, i32
  }
  func.func @transform_10(%arg0: i32) -> (i32, i32) {
    %c0_i32 = arith.constant 0 : i32
    %c0_i32_0 = arith.constant 0 : i32
    %c0_i32_1 = arith.constant 0 : i32
    return %c0_i32, %c0_i32_0 : i32, i32
  }
  func.func @transform_11(%arg0: i32) -> (i32, i32) {
    %c0_i32 = arith.constant 0 : i32
    %c0_i32_0 = arith.constant 0 : i32
    %c0_i32_1 = arith.constant 0 : i32
    return %c0_i32, %c0_i32_0 : i32, i32
  }
}

</mosaic_0001>

<bundles_post_ra>
// kernel: closed_call.22
= control target key start
LH: loop header
LB: loop body
LE: loop exit
PB: predicated region body
PF: predicated region fallthrough
CT: control target
= control target key end

     0   :  { %9 = vsyncpa [#allocation3], 0  ;;  %s1034_s0 = inlined_call_operand.vmem [shape: bf16[1,128], index: 0, kind: input, shape index: {}]   ;;  %s1035_s1 = inlined_call_operand.hbm [shape: bf16[4,128,512], index: 1, kind: input, shape index: {}]   ;;  %s1036_s2 = inlined_call_operand.vmem [shape: f32[1,2048], index: 2, kind: output, shape index: {0}]   ;;  %s1037_s3 = inlined_call_operand.hbm [shape: f32[1,1], index: 3, kind: output, shape index: {1}]  }
   0x1   :  { %11 = vsyncpa [#allocation3 + $0x1], 0 }
   0x2   :  { %12 = vsyncpa [#allocation4], 0  ;;  %s884_s12 = smov 0   ;;  %s886_s13 = smov 0  }
   0x3   :  { %s888_s14 = smov 0   ;;  %s890_s15 = smov 0  }
   0x4 LB: > { %s903_s16 = sadd.s32 4294967295, %s855_s15   ;;  %s906_s17 = sadd.s32 1, %s855_s15   ;;  %s855_s15 = sphi %s890_s15, %s1046_s15   ;;  %s851_s14 = sphi %s888_s14, %s1045_s14   ;;  %s847_s13 = sphi %s886_s13, %s1044_s13   ;;  %s843_s12 = sphi %s884_s12, %s1043_s12  }
   0x5   : > { %s43_s18 = ssub.s32 %s855_s15, %s906_s17  ;;  %s46_s19 = sadd.s32 1, %s851_s14 }
   0x6   : > { %p44_p0 = scmp.eq.s32.totalorder %s43_s18, 0  ;;  %p53_p1 = scmp.ne.s32.totalorder %s851_s14, %s847_s13 }
   0x7   : > { %p54_p2 = scmp.eq.s32.totalorder %s855_s15, 0  ;;  %p59_p3 = scmp.ne.s32.totalorder %s847_s13, %s843_s12 }
   0x8   : > { %s916_s20 = scalar_select %p44_p0, %s851_s14, %s46_s19  }
   0x9   : > { %p55_p4 = por %p54_p2, %p53_p1  ;;  %p60_p5 = scmp.eq.s32.totalorder %s903_s16, 0 }
   0xa   : > { %p676_p6 = scmp.lt.s32.totalorder %s855_s15, 4  ;;  %s133_s22 = sand.u32 1, %s851_s14  }
   0xb   : > { %p920_p7 = por %p60_p5, %p59_p3  ;;  %s620_s23 = sshll.u32 %s133_s22, 8 }
   0xc   : > { %s663_s24 = sshll.u32 %s855_s15, 12  ;;  %s137_s28 = scalar_lea.vmem [#allocation2], %s620_s23 }
   0xd   : > { %s1039_s21 = scalar_select %p920_p7, 1, 0 }
   0xe   : > { %s929_s27 = scalar_lea.hbm %s1035_s1, %s663_s24  ;;  %s144_s29 = sshll.u32 %s137_s28, 4  ;;  %s931_s29 = int_to_ptr.vmem [resolvable:$true] %s144_s29 }
   0xf   : > { %p933_p8 = pnand %p676_p6, %p55_p4  ;;  %s938_s4 = scalar_lea.sflag [#allocation3], %s133_s22 }
  0x10   : > { %s765_s5 = scalar_lea.hbm %s929_s27, 4096  ;;  %s770_s8 = scalar_lea.hbm %s1035_s1, 16384 }
  0x11   : > { %p766_p10 = scmp.ne.s32.totalorder %s929_s27, %s765_s5  ;;  %p767_p11 = pneg %p933_p8 }
  0x12   : > { %p771_p0 = scmp.lt.s32.totalorder %s929_s27, %s1035_s1  ;;  %p772_p1 = scmp.lt.s32.totalorder %s770_s8, %s765_s5 }
  0x13   : > { %p768_p12 = pnand %p767_p11, %p766_p10 }
  0x14   : > { %p773_p2 = por %p772_p1, %p771_p0 }
  0x15   : > { %p769_p13 = pneg %p768_p12 }
  0x17   : > { %p774_p3 = pnand %p773_p2, %p769_p13 }
  0x19   : > { %777 = shalt.err (!%p774_p3)
}
  0x1a   : > { %s778_s11 = scalar_lea.vmem %s931_s29, 4096  ;;  %s857_s12 = smov [#allocation2]  }
  0x1b   : > { %p779_p4 = scmp.ne.s32.totalorder %s931_s29, %s778_s11  ;;  %s783_s18 = sshll.u32 %s857_s12, 4  ;;  %s784_s18 = int_to_ptr.vmem [resolvable:$false] %s783_s18 }
  0x1c   : > { %s785_s19 = scalar_lea.vmem %s784_s18, 8192  ;;  %p786_p10 = scmp.lt.s32.totalorder %s931_s29, %s784_s18 }
  0x1d   : > { %p781_p5 = pnand %p779_p4, %p767_p11  ;;  %p787_p12 = scmp.lt.s32.totalorder %s785_s19, %s778_s11 }
  0x1f   : > { %p782_p6 = pneg %p781_p5  ;;  %p788_p9 = por %p787_p12, %p786_p10 }
  0x21   : > { %p789_p7 = pnand %p788_p9, %p782_p6 }
  0x23   : > { %792 = shalt.err (!%p789_p7)
}
  0x24   : > { %s858_s22 = smov 256   ;;  %s859_s23 = smov 16  }
  0x25   : > { %675 = dma.hbm_to_vmem [thread:$0]  (!%p933_p8), %s929_s27, 4096, %s931_s29, %s938_s4, %s858_s22, %s858_s22, %s859_s23  }
  0x26   : > { %p152_p11 = scmp.lt.s32.totalorder %s855_s15, 5  ;;  %p1041_p13 = scmp.ge.s32.totalorder %s855_s15, 1 }
  0x28   : > { %p153_p0 = pnand %p1041_p13, %p152_p11 }
  0x29   : > { %s158_s24 = sand.u32 (!%p153_p0), 1, %s847_s13   ;;  %p1042_p7 = scmp.ne.s32.totalorder (!%p153_p0), %s1039_s21, 0 }
  0x2a   : > { %156 = sbr.rel (%p153_p0) target bundleno = 504 (0x1f8), region = 28  ;;  %s624_s25 = sshll.u32 (!%p153_p0), %s158_s24, 8 }
  0x2b   : > { %s159_s26 = scalar_lea.sflag (!%p153_p0), [#allocation3], %s158_s24  ;;  %s963_s28 = scalar_lea.vmem (!%p153_p0), [#allocation2], %s624_s25 }
  0x2f   : > { %834 = dma.done.wait (%p1042_p7), %s159_s26, 4096  }
  0x30   : > { %836 = vsyncadd (%p1042_p7), %s159_s26, 4294963200  ;;  %v860_v0 = vmov 0   ;;  %v717_v1 = vld [vmem:[%s963_s28 + $0xe4] ss:$16 sps:$4 sm:$0xff]   ;;  %v719_v2 = vld [vmem:[%s963_s28 + $0xec] ss:$16 sps:$4 sm:$0xff]   ;;  %v478_v36 = vlaneseq }
  0x31   : > { %415 = vmatprep.mubr.bf16.mxu0 %v860_v0  ;;  %456 = vmatprep.mubr.bf16.mxu1 %v860_v0  ;;  %v721_v3 = vld [vmem:[%s963_s28 + $0xe0] ss:$16 sps:$4 sm:$0xff]   ;;  %v722_v4 = vld [vmem:[%s963_s28 + $0xe8] ss:$16 sps:$4 sm:$0xff]   ;;  %v723_v5 = vld [vmem:[%s963_s28 + $0xc4] ss:$16 sps:$4 sm:$0xff]  }
  0x32   : > { %383 = vmatprep.subr.bf16.mxu0 %v717_v1  ;;  %424 = vmatprep.subr.bf16.mxu1 %v719_v2  ;;  %v725_v6 = vld [vmem:[%s963_s28 + $0xcc] ss:$16 sps:$4 sm:$0xff]   ;;  %v727_v7 = vld [vmem:[%s963_s28 + $0xc0] ss:$16 sps:$4 sm:$0xff]   ;;  %v728_v8 = vld [vmem:[%s963_s28 + $0xc8] ss:$16 sps:$4 sm:$0xff]  }
  0x33   : > { %384 = vmatpush1.bf16.msra.mxu0 %v721_v3  ;;  %425 = vmatpush1.bf16.msra.mxu1 %v722_v4  ;;  %v729_v9 = vld [vmem:[%s963_s28 + $0xa4] ss:$16 sps:$4 sm:$0xff]   ;;  %v731_v10 = vld [vmem:[%s963_s28 + $0xac] ss:$16 sps:$4 sm:$0xff]   ;;  %v733_v11 = vld [vmem:[%s963_s28 + $0xa0] ss:$16 sps:$4 sm:$0xff]  }
  0x34   : > { %385 = vmatprep.subr.bf16.mxu0 %v723_v5  ;;  %426 = vmatprep.subr.bf16.mxu1 %v725_v6  ;;  %v734_v12 = vld [vmem:[%s963_s28 + $0xa8] ss:$16 sps:$4 sm:$0xff]   ;;  %v735_v13 = vld [vmem:[%s963_s28 + $0x84] ss:$16 sps:$4 sm:$0xff]   ;;  %v737_v14 = vld [vmem:[%s963_s28 + $0x8c] ss:$16 sps:$4 sm:$0xff]  }
  0x35   : > { %v739_v15 = vld [vmem:[%s963_s28 + $0x80] ss:$16 sps:$4 sm:$0xff]   ;;  %v740_v16 = vld [vmem:[%s963_s28 + $0x88] ss:$16 sps:$4 sm:$0xff]   ;;  %v741_v17 = vld [vmem:[%s963_s28 + $0x64] ss:$16 sps:$4 sm:$0xff]  }
  0x36   : > { %v743_v18 = vld [vmem:[%s963_s28 + $0x6c] ss:$16 sps:$4 sm:$0xff]   ;;  %v745_v19 = vld [vmem:[%s963_s28 + $0x60] ss:$16 sps:$4 sm:$0xff]   ;;  %v746_v20 = vld [vmem:[%s963_s28 + $0x68] ss:$16 sps:$4 sm:$0xff]  }
  0x37   : > { %386 = vmatpush1.bf16.msra.mxu0 %v727_v7  ;;  %427 = vmatpush1.bf16.msra.mxu1 %v728_v8  ;;  %v747_v21 = vld [vmem:[%s963_s28 + $0x44] ss:$16 sps:$4 sm:$0xff]   ;;  %v749_v22 = vld [vmem:[%s963_s28 + $0x4c] ss:$16 sps:$4 sm:$0xff]   ;;  %v751_v23 = vld [vmem:[%s963_s28 + $0x40] ss:$16 sps:$4 sm:$0xff]  }
  0x38   : > { %387 = vmatprep.subr.bf16.mxu0 %v729_v9  ;;  %428 = vmatprep.subr.bf16.mxu1 %v731_v10  ;;  %v752_v24 = vld [vmem:[%s963_s28 + $0x48] ss:$16 sps:$4 sm:$0xff]   ;;  %v753_v25 = vld [vmem:[%s963_s28 + $0x24] ss:$16 sps:$4 sm:$0xff]   ;;  %v755_v26 = vld [vmem:[%s963_s28 + $0x2c] ss:$16 sps:$4 sm:$0xff]  }
  0x39   : > { %v757_v27 = vld [vmem:[%s963_s28 + $0x20] ss:$16 sps:$4 sm:$0xff]   ;;  %v758_v28 = vld [vmem:[%s963_s28 + $0x28] ss:$16 sps:$4 sm:$0xff]   ;;  %v759_v29 = vld [vmem:[%s963_s28 + $0x4] ss:$16 sps:$4 sm:$0xff]  }
  0x3a   : > { %v761_v30 = vld [vmem:[%s963_s28 + $0xc] ss:$16 sps:$4 sm:$0xff]   ;;  %v763_v31 = vld [vmem:[%s963_s28] ss:$16 sps:$4 sm:$0xff]   ;;  %v764_v32 = vld [vmem:[%s963_s28 + $0x8] ss:$16 sps:$4 sm:$0xff]  }
  0x3b   : > { %388 = vmatpush1.bf16.msra.mxu0 %v733_v11  ;;  %429 = vmatpush1.bf16.msra.mxu1 %v734_v12  ;;  %v190_v33 = vld [vmem:[%s1034_s0] sm:$0x1]  ;;  %v861_v34 = vmov 1966171168   ;;  %v479_v38 = vshrl.u32 %v478_v36, 7  ;;  %s625_s27 = sshll.u32 %s903_s16, 2 }
  0x3c   : > { %389 = vmatprep.subr.bf16.mxu0 %v735_v13  ;;  %430 = vmatprep.subr.bf16.mxu1 %v737_v14  ;;  %v476_v35 = vunpack.c.l.s4 %v861_v34  ;;  %p185_p8 = scmp.lt.s32.totalorder %s625_s27, 15  ;;  %vm500_vm0 = vcmp.lt.s32.totalorder %v478_v36, 512  ;;  %p658_p9 = scmp.ne.s32.totalorder %s903_s16, 0 }
  0x3e   : > { %v477_v37 = vunpack.c.0.s8 %v476_v35  ;;  %s1048_s27 = smov (!%p185_p8, %s625_s27), 15 }
  0x3f   : > { %390 = vmatpush1.bf16.msra.mxu0 %v739_v15  ;;  %431 = vmatpush1.bf16.msra.mxu1 %v740_v16  ;;  %s187_s4 = scalar_lea.vmem %s1036_s2, %s1048_s27 }
  0x40   : > { %391 = vmatprep.subr.bf16.mxu0 %v741_v17  ;;  %432 = vmatprep.subr.bf16.mxu1 %v743_v18  ;;  %v480_v46 = vsub.s32 %v477_v37, %v479_v38 }
  0x43   : > { %392 = vmatpush1.bf16.msra.mxu0 %v745_v19  ;;  %433 = vmatpush1.bf16.msra.mxu1 %v746_v20 }
  0x44   : > { %393 = vmatprep.subr.bf16.mxu0 %v747_v21  ;;  %434 = vmatprep.subr.bf16.mxu1 %v749_v22 }
  0x47   : > { %394 = vmatpush1.bf16.msra.mxu0 %v751_v23  ;;  %435 = vmatpush1.bf16.msra.mxu1 %v752_v24 }
  0x48   : > { %395 = vmatprep.subr.bf16.mxu0 %v753_v25  ;;  %436 = vmatprep.subr.bf16.mxu1 %v755_v26 }
  0x4b   : > { %396 = vmatpush1.bf16.msra.mxu0 %v757_v27  ;;  %437 = vmatpush1.bf16.msra.mxu1 %v758_v28 }
  0x4c   : > { %397 = vmatprep.subr.bf16.mxu0 %v759_v29  ;;  %438 = vmatprep.subr.bf16.mxu1 %v761_v30 }
  0x4f   : > { %398 = vmatpush1.bf16.msra.mxu0 %v763_v31  ;;  %439 = vmatpush1.bf16.msra.mxu1 %v764_v32 }
  0x52   : > { %416 = vmatmul.mubr.bf16.vlgmr.msra.gmra.mxu0 %v190_v33  ;;  %457 = vmatmul.mubr.bf16.vlgmr.msra.gmra.mxu1 %v190_v33 }
 0x112   : > { %v417_v39 = vpop.f32.mrf.mxu0  ;;  %v458_v40 = vpop.f32.mrf.mxu1 }
 0x113   : > { %v465_v41 = vmul.f32 0.6666667, %v417_v39  ;;  %v467_v44 = vmul.f32 0.6666667, %v458_v40 }
 0x114   : > { %v419_v42 = vpop.f32.mrf.mxu0  ;;  %v460_v43 = vpop.f32.mrf.mxu1 }
 0x115   : > { %v466_v45 = vmul.f32 0.6666667, %v419_v42  ;;  %v468_v47 = vmul.f32 0.6666667, %v460_v43 }
 0x116   : > { %v421_v48 = vpop.f32.mrf.mxu0  ;;  %v462_v49 = vpop.f32.mrf.mxu1 }
 0x117   : > { %v473_v50 = vcombine.low %v465_v41, %v466_v45  ;;  %v474_v51 = vcombine.low %v467_v44, %v468_v47 }
 0x118   : > { %v422_v52 = vpop.f32.mrf.mxu0  ;;  %v463_v53 = vpop.f32.mrf.mxu1 }
 0x119   : > { %v481_v54 = vrot.slane %v473_v50, %v480_v46  ;;  %v488_v55 = vrot.slane %v474_v51, %v480_v46 }
 0x11b   : > { %v489_v56 = vcombine.low %v481_v54, %v488_v55  ;;  %506 = sbr.rel (%p658_p9) target bundleno = 290 (0x122), region = 36 }
 0x11d   : > { %v496_v57 = vrot.slane %v489_v56, %v480_v46 }
 0x11f   : > { %502 = vst.msk [vmem:[%s187_s4] sm:$0xf] %vm500_vm0, %v496_v57 }
 0x120   : > { %vm507_vm1 = vcmask 0   ;;  %v862_v58 = vmov -inf  }
 0x121   : > { %508 = vst.msk [vmem:[#allocation5] sm:$0x1] %vm507_vm1, %v862_v58 }
 0x122 PF: > { %vm510_vm2 = vcmask 1040384   ;;  %s863_s5 = smov [#allocation5]   ;;  %vm529_vm3 = vcmask 0   ;;  %p677_p1 = scmp.eq.s32.totalorder %s903_s16, 3 }
 0x123   : > { %v511_v59 = vsel %vm510_vm2, %v465_v41, -inf  ;;  %v512_v60 = vsel %vm510_vm2, %v466_v45, -inf  ;;  %v513_v61 = vsel %vm510_vm2, %v467_v44, -inf  ;;  %v514_v62 = vsel %vm510_vm2, %v468_v47, -inf  ;;  %s546_s6 = sshll.u32 %s863_s5, 4  ;;  %s547_s6 = int_to_ptr.vmem [resolvable:$true] %s546_s6 }
 0x124   : > { %v515_v63 = vmax.f32 %v511_v59, %v512_v60  ;;  %v516_v0 = vmax.f32 %v513_v61, %v514_v62  ;;  %s793_s8 = scalar_lea.vmem %s547_s6, 16  ;;  %s799_s9 = scalar_lea.vmem %s547_s6, 32 }
 0x125   : > { %p794_p2 = scmp.ne.s32.totalorder %s547_s6, %s793_s8  ;;  %p800_p5 = scmp.lt.s32.totalorder %s547_s6, %s547_s6 }
 0x126   : > { %v517_v1 = vmax.f32 %v515_v63, %v516_v0  ;;  %p801_p6 = scmp.lt.s32.totalorder %s799_s9, %s793_s8 }
 0x127   : > { %p795_p3 = pnand %p794_p2, %p677_p1 }
 0x128   : > { %518 = vmax.xlane.f32.xlu0 %v517_v1  ;;  %v509_v9 = vld [vmem:[#allocation5] sm:$0x1]  ;;  %p802_p10 = por %p801_p6, %p800_p5 }
 0x129   : > { %p796_p4 = pneg %p795_p3 }
 0x12b   : > { %p803_p12 = pnand %p802_p10, %p796_p4 }
 0x1b1   : > { %v519_v2 = vpop.xlane.xlu0 %518 }
 0x1b2   : > { %v520_v3 = vrot.slane %v519_v2, 4 }
 0x1b4   : > { %v521_v4 = vmax.f32 %v519_v2, %v520_v3 }
 0x1b6   : > { %v522_v5 = vrot.slane %v521_v4, 2 }
 0x1b8   : > { %v523_v6 = vmax.f32 %v521_v4, %v522_v5 }
 0x1ba   : > { %v524_v7 = vrot.slane %v523_v6, 1 }
 0x1bc   : > { %v525_v8 = vmax.f32 %v523_v6, %v524_v7 }
 0x1be   : > { %664 = vpush %v525_v8 }
 0x1ef   : > { %s665_s7 = spop %664 }
 0x1f0   : > { %v527_v10 = vstv %s665_s7 }
 0x1f1   : > { %v528_v11 = vmax.f32 %v509_v9, %v527_v10 }
 0x1f3   : > { %530 = vst.msk [vmem:[#allocation5] sm:$0x1] %vm529_vm3, %v528_v11 }
 0x1f4   : > { %806 = shalt.err (!%p803_p12)
}
 0x1f5   : > { %669 = dma.vmem_to_hbm [thread:$0]  (%p677_p1), %s547_s6, 16, %s1037_s3, [#allocation4]  }
 0x1f6   : > { %838 = dma.done.wait (%p677_p1), [#allocation4], 16  }
 0x1f7   : > { %840 = vsyncadd (%p677_p1), [#allocation4], 4294967280 }
 0x1f8 PF: > { %p15_p11 = scmp.ge.s32.totalorder %s906_s17, 6   ;;  %s1043_s12 = smov %s847_s13 }
 0x1f9   : > { %s1044_s13 = smov %s851_s14  ;;  %s1045_s14 = smov %s916_s20 }
 0x1fa   : > { %s1046_s15 = smov %s906_s17  ;;  %17 = sbr.rel (!%p15_p11) target bundleno = 4 (0x4), region = 81 }
 0x1ff   :  { %566 = vsyncpa [#allocation3], 1 }
 0x200   :  { %568 = vsyncpa [#allocation3 + $0x1], 1 }
 0x201   :  { %569 = vsyncpa [#allocation4], 1 }
 0x202   :  { %571 = vsyncpa [#allocation4 + $0x1], 1 }

// kernel: closed_call.21
= control target key start
LH: loop header
LB: loop body
LE: loop exit
PB: predicated region body
PF: predicated region fallthrough
CT: control target
= control target key end

     0   :  { %s2344_s0 = inlined_call_operand.<no memory space> [shape: s32[1], index: 0, kind: input, shape index: {}]   ;;  %s2345_s1 = inlined_call_operand.vmem [shape: f32[1,128], index: 1, kind: input, shape index: {}]   ;;  %s2346_s2 = inlined_call_operand.vmem [shape: f32[16,256], index: 2, kind: input, shape index: {}, may-alias: {2,12}]   ;;  %s2347_s3 = inlined_call_operand.vmem [shape: bf16[128,128], index: 3, kind: input, shape index: {}]   ;;  %s2348_s4 = inlined_call_operand.vmem [shape: bf16[128,256], index: 4, kind: input, shape index: {}]   ;;  %s2349_s5 = inlined_call_operand.hbm [shape: bf16[128,128], index: 5, kind: input, shape index: {}]   ;;  %s2350_s6 = inlined_call_operand.hbm [shape: bf16[2,128,256], index: 6, kind: input, shape index: {}]   ;;  %s2351_s7 = inlined_call_operand.hbm [shape: bf16[256,128], index: 7, kind: input, shape index: {}]   ;;  %s2352_s8 = inlined_call_operand.vmem [shape: f32[1,128], index: 8, kind: input, shape index: {}, may-alias: {8,9,10}]   ;;  %s2353_s9 = inlined_call_operand.vmem [shape: f32[1,128], index: 9, kind: input, shape index: {}, may-alias: {8,9,10}]   ;;  %s2354_s10 = inlined_call_operand.vmem [shape: f32[1,128], index: 10, kind: input, shape index: {}, may-alias: {8,9,10}]   ;;  %s2355_s11 = inlined_call_operand.vmem [shape: f32[1,128], index: 11, kind: output, shape index: {0}]   ;;  %s2356_s12 = inlined_call_operand.vmem [shape: f32[16,256], index: 12, kind: output, shape index: {1}, may-alias: {2,12}]  }
   0x1   :  { %2362 = sst [smem:[#allocation22_spill]] %s2350_s6 }
   0x2   :  { %18 = sst [smem:[#allocation7]] %s2344_s0 }
   0x3   :  { %19 = vsyncpa [#allocation9], 0 }
   0x4   :  { %20 = vsyncpa [#allocation11], 0 }
   0x5   :  { %22 = vsyncpa [#allocation11 + $0x1], 0  ;;  %s1995_s23 = smov 0   ;;  %s1997_s24 = smov 0  }
   0x6   :  { %s1999_s25 = smov 0   ;;  %s2001_s26 = smov 0  }
   0x7 LB: > { %2363 = sst [smem:[#allocation19_spill]] %s1907_s25  ;;  %s2016_s0 = sadd.s32 1, %s1911_s26   ;;  %s1911_s26 = sphi %s2001_s26, %s2375_s26   ;;  %s1907_s25 = sphi %s1999_s25, %s2377_s25   ;;  %s1903_s24 = sphi %s1997_s24, %s2379_s24   ;;  %s1899_s23 = sphi %s1995_s23, %s2378_s23  }
   0x8   : > { %2364 = sst [smem:[#allocation20_spill]] %s2016_s0  ;;  %s140_s27 = sadd.s32 1, %s1907_s25 }
   0x9   : > { %s137_s28 = ssub.s32 %s1911_s26, %s2016_s0  ;;  %p147_p0 = scmp.ne.s32.totalorder %s1907_s25, %s1903_s24 }
   0xa   : > { %p138_p1 = scmp.eq.s32.totalorder %s137_s28, 0  ;;  %p148_p2 = scmp.eq.s32.totalorder %s1911_s26, 0 }
   0xb   : > { %p1655_p3 = scmp.lt.s32.totalorder %s1911_s26, 2  ;;  %s321_s30 = sand.u32 1, %s1911_s26  }
   0xc   : > { %s2026_s29 = scalar_select %p138_p1, %s1907_s25, %s140_s27  }
   0xd   : > { %p149_p4 = por %p148_p2, %p147_p0  ;;  %s323_s13 = sand.u32 1, %s1907_s25  }
   0xe   : > { %2365 = sst [smem:[#allocation21_spill]] %s2026_s29  ;;  %s1452_s14 = sshll.u32 %s323_s13, 7 }
   0xf   : > { %s1529_s15 = sshll.u32 %s1911_s26, 11  ;;  %s2366_s6 = sld [smem:[#allocation22_spill]] }
  0x10   : > { %s325_s19 = scalar_lea.vmem [#allocation10], %s1452_s14  ;;  %p2038_p5 = pnand %p1655_p3, %p149_p4 }
  0x11   : > { %s332_s20 = sshll.u32 %s325_s19, 4  ;;  %s2044_s22 = scalar_lea.sflag [#allocation11], %s321_s30  ;;  %s2042_s20 = int_to_ptr.vmem [resolvable:$true] %s332_s20 }
  0x12   : > { %p1789_p7 = pneg %p2038_p5 }
  0x15   : > { %s2036_s18 = scalar_lea.hbm %s2366_s6, %s1529_s15  ;;  %s1792_s15 = scalar_lea.hbm %s2366_s6, 4096 }
  0x16   : > { %s1787_s27 = scalar_lea.hbm %s2036_s18, 2048  ;;  %p1793_p10 = scmp.lt.s32.totalorder %s2036_s18, %s2366_s6 }
  0x17   : > { %p1788_p6 = scmp.ne.s32.totalorder %s2036_s18, %s1787_s27  ;;  %p1794_p11 = scmp.lt.s32.totalorder %s1792_s15, %s1787_s27 }
  0x19   : > { %p1790_p8 = pnand %p1789_p7, %p1788_p6  ;;  %p1795_p12 = por %p1794_p11, %p1793_p10 }
  0x1b   : > { %p1791_p9 = pneg %p1790_p8 }
  0x1d   : > { %p1796_p13 = pnand %p1795_p12, %p1791_p9 }
  0x1f   : > { %1799 = shalt.err (!%p1796_p13)
}
  0x20   : > { %s1800_s30 = scalar_lea.vmem %s2042_s20, 2048  ;;  %s1913_s19 = smov [#allocation10]  }
  0x21   : > { %p1801_p0 = scmp.ne.s32.totalorder %s2042_s20, %s1800_s30  ;;  %s1805_s28 = sshll.u32 %s1913_s19, 4  ;;  %s1806_s28 = int_to_ptr.vmem [resolvable:$false] %s1805_s28 }
  0x22   : > { %s1807_s14 = scalar_lea.vmem %s1806_s28, 4096  ;;  %p1808_p3 = scmp.lt.s32.totalorder %s2042_s20, %s1806_s28 }
  0x23   : > { %p1803_p1 = pnand %p1801_p0, %p1789_p7  ;;  %p1809_p4 = scmp.lt.s32.totalorder %s1807_s14, %s1800_s30 }
  0x25   : > { %p1804_p2 = pneg %p1803_p1  ;;  %p1810_p6 = por %p1809_p4, %p1808_p3 }
  0x27   : > { %p1811_p8 = pnand %p1810_p6, %p1804_p2 }
  0x29   : > { %1814 = shalt.err (!%p1811_p8)
}
  0x2a   : > { %s1914_s27 = smov 128   ;;  %s1915_s15 = smov 8  }
  0x2b   : > { %1650 = dma.hbm_to_vmem [thread:$0]  (!%p2038_p5), %s2036_s18, 2048, %s2042_s20, %s2044_s22, %s1914_s27, %s1914_s27, %s1915_s15  }
  0x2c   : > { %s1455_s16 = sshll.u32 %s323_s13, 6  ;;  %s2074_s17 = sadd.s32 4294967295, %s1911_s26  }
  0x2d   : > { %p153_p9 = scmp.ne.s32.totalorder %s1903_s24, %s1899_s23  ;;  %p2360_p10 = scmp.eq.s32.totalorder %s2074_s17, 0 }
  0x2e   : > { %p1449_p11 = scmp.ge.s32.totalorder %s1911_s26, 1  ;;  %p274_p12 = scmp.lt.s32.totalorder %s1911_s26, 3 }
  0x2f   : > { %p2083_p13 = por %p2360_p10, %p153_p9  ;;  %s346_s13 = scalar_lea.vmem [#allocation12], %s1455_s16 }
  0x30   : > { %p2088_p1 = pnand %p1449_p11, %p274_p12  ;;  %s353_s20 = sshll.u32 %s346_s13, 4  ;;  %s2106_s20 = int_to_ptr.vmem [resolvable:$true] %s353_s20 }
  0x31   : > { %s2368_s30 = scalar_select %p2083_p13, 1, 0 }
  0x32   : > { %s1916_s19 = smov [#allocation8]   ;;  %p1643_p2 = pneg %p2088_p1 }
  0x33   : > { %s298_s28 = sshll.u32 %s1916_s19, 4  ;;  %s1530_s23 = sshll.u32 %s1911_s26, 10  ;;  %s299_s28 = int_to_ptr.vmem [resolvable:$true] %s298_s28 }
  0x34   : > { %p2097_p3 = pnand %p1643_p2, %p2360_p10  ;;  %s2104_s6 = scalar_lea.hbm %s2351_s7, %s1530_s23 }
  0x35   : > { %s1826_s16 = scalar_lea.vmem %s299_s28, 1024  ;;  %p1834_p11 = scmp.lt.s32.totalorder %s299_s28, %s299_s28 }
  0x36   : > { %p1817_p4 = pneg %p2097_p3  ;;  %p1827_p6 = scmp.ne.s32.totalorder %s299_s28, %s1826_s16 }
  0x37   : > { %p1835_p12 = scmp.lt.s32.totalorder %s1826_s16, %s1826_s16 }
  0x38   : > { %p1829_p8 = pnand %p1827_p6, %p1817_p4 }
  0x39   : > { %p1836_p2 = por %p1835_p12, %p1834_p11 }
  0x3a   : > { %p1830_p9 = pneg %p1829_p8 }
  0x3c   : > { %p1837_p0 = pnand %p1836_p2, %p1830_p9 }
  0x3e   : > { %1840 = shalt.err (!%p1837_p0)
}
  0x3f   : > { %s1917_s26 = smov 64   ;;  %s1918_s13 = smov 4  }
  0x40   : > { %1646 = dma.hbm_to_vmem [thread:$0]  (!%p2097_p3), %s2349_s5, 1024, %s299_s28, [#allocation9], %s1917_s26, %s1917_s26, %s1918_s13  }
  0x41   : > { %s1841_s27 = scalar_lea.hbm %s2104_s6, 1024  ;;  %s1846_s29 = scalar_lea.hbm %s2351_s7, 2048 }
  0x42   : > { %p1842_p4 = scmp.ne.s32.totalorder %s2104_s6, %s1841_s27  ;;  %p1847_p8 = scmp.lt.s32.totalorder %s2104_s6, %s2351_s7 }
  0x43   : > { %p1848_p9 = scmp.lt.s32.totalorder %s1846_s29, %s1841_s27 }
  0x44   : > { %p1844_p0 = pnand %p1842_p4, %p1789_p7 }
  0x45   : > { %p1849_p11 = por %p1848_p9, %p1847_p8 }
  0x46   : > { %p1845_p6 = pneg %p1844_p0 }
  0x48   : > { %p1850_p12 = pnand %p1849_p11, %p1845_p6 }
  0x4a   : > { %1853 = shalt.err (!%p1850_p12)
}
  0x4b   : > { %s1854_s28 = scalar_lea.vmem %s2106_s20, 1024  ;;  %s1919_s14 = smov [#allocation12]  }
  0x4c   : > { %p1855_p3 = scmp.ne.s32.totalorder %s2106_s20, %s1854_s28  ;;  %s1859_s19 = sshll.u32 %s1919_s14, 4  ;;  %s1860_s19 = int_to_ptr.vmem [resolvable:$false] %s1859_s19 }
  0x4d   : > { %s1861_s23 = scalar_lea.vmem %s1860_s19, 2048  ;;  %p1862_p0 = scmp.lt.s32.totalorder %s2106_s20, %s1860_s19 }
  0x4e   : > { %p1857_p2 = pnand %p1855_p3, %p1789_p7  ;;  %p1863_p10 = scmp.lt.s32.totalorder %s1861_s23, %s1854_s28 }
  0x50   : > { %p1858_p4 = pneg %p1857_p2  ;;  %p1864_p13 = por %p1863_p10, %p1862_p0 }
  0x52   : > { %p1865_p8 = pnand %p1864_p13, %p1858_p4 }
  0x54   : > { %1868 = shalt.err (!%p1865_p8)
}
  0x55   : > { %1653 = dma.hbm_to_vmem [thread:$0]  (!%p2038_p5), %s2104_s6, 1024, %s2106_s20, %s2044_s22, %s1917_s26, %s1917_s26, %s1918_s13  }
  0x56   : > { %365 = sbr.rel (%p2088_p1) target bundleno = 2205 (0x89d), region = 60  ;;  %p2371_p7 = scmp.eq.s32.totalorder (!%p2088_p1), %s2074_s17, 0 }
  0x5b   : > { %1886 = dma.done.wait (%p2371_p7), [#allocation9], 1024   ;;  %p2372_p6 = pmov %p2371_p7 }
  0x5c   : > { %s371_s25 = sand.u32 1, %s2074_s17   ;;  %s373_s0 = sand.u32 1, %s1903_s24  }
  0x5d   : > { %1888 = vsyncadd (%p2372_p6), [#allocation9], 4294966272  ;;  %s1460_s29 = sshll.u32 %s373_s0, 7  ;;  %s372_s21 = scalar_lea.sflag [#allocation11], %s371_s25 }
  0x5e   : > { %s2152_s27 = scalar_lea.vmem [#allocation10], %s1460_s29  ;;  %p2373_p10 = scmp.ne.s32.totalorder %s2368_s30, 0 }
  0x60   : > { %1890 = dma.done.wait (%p2373_p10), %s372_s21, 3072  }
  0x61   : > { %1892 = vsyncadd (%p2373_p10), %s372_s21, 4294964224  ;;  %s1461_s6 = sshll.u32 %s373_s0, 6  ;;  %p2374_p5 = scmp.ne.s32.totalorder %s2074_s17, 0 }
  0x62   : > { %s2158_s22 = scalar_lea.vmem [#allocation12], %s1461_s6  ;;  %s2162_s18 = sld [smem:[#allocation7]] (!%p2374_p5) }
  0x63   : > { %426 = sbr.rel (%p2374_p5) target bundleno = 1572 (0x624), region = 76 }
  0x68   : > { %v461_v0 = vld [vmem:[%s2346_s2] sm:$0xff]  ;;  %v463_v1 = vld [vmem:[%s2346_s2 + $0x8] sm:$0xff]  ;;  %v465_v2 = vld [vmem:[%s2346_s2 + $0x10] sm:$0xff] }
  0x69   : > { %462 = vst [vmem:[#allocation2] sm:$0xff] %v461_v0  ;;  %464 = vst [vmem:[#allocation2 + $0x8] sm:$0xff] %v463_v1  ;;  %v467_v3 = vld [vmem:[%s2346_s2 + $0x18] sm:$0xff] }
  0x6a   : > { %466 = vst [vmem:[#allocation2 + $0x10] sm:$0xff] %v465_v2  ;;  %468 = vst [vmem:[#allocation2 + $0x18] sm:$0xff] %v467_v3 }
  0x6b   : > { %476 = vsyncadd [#allocation6], 512  ;;  %v2179_v4 = vld [vmem:[%s2345_s1] sm:$0x1]  ;;  %vm480_vm0 = vcmask 1040384   ;;  %v1920_v6 = vmov 0.0  }
  0x6c   : > { %v479_v5 = vmul.f32 %v2179_v4, %v2179_v4  ;;  %1563 = vmatprep.subr.bf16.mxu0 %v1920_v6  ;;  %v1701_v7 = vld [vmem:[%s2348_s4 + $0x74] ss:$8 sps:$4 sm:$0xff]   ;;  %v1704_v10 = vld [vmem:[%s2348_s4 + $0x70] ss:$8 sps:$4 sm:$0xff]   ;;  %v1705_v11 = vld [vmem:[%s2348_s4 + $0x64] ss:$8 sps:$4 sm:$0xff]  }
  0x6d   : > { %v1703_v8 = vld [vmem:[%s2347_s3 + $0x38] sm:$0xff]   ;;  %691 = vmatprep.subr.bf16.mxu1 %v1701_v7  ;;  %v1707_v12 = vld [vmem:[%s2347_s3 + $0x30] sm:$0xff]   ;;  %v1708_v13 = vld [vmem:[%s2348_s4 + $0x60] ss:$8 sps:$4 sm:$0xff]   ;;  %vm1921_vm1 = vmmov 0   ;;  %v1922_v24 = vmov 0  }
  0x6e   : > { %v481_v9 = vsel %vm480_vm0, %v479_v5, 0.0  ;;  %1564 = vmatpush3.bf16.msra.mxu0 %v1703_v8  ;;  %692 = vmatpush1.bf16.msra.mxu1 %v1704_v10  ;;  %v1709_v14 = vld [vmem:[%s2348_s4 + $0x54] ss:$8 sps:$4 sm:$0xff]   ;;  %v1711_v15 = vld [vmem:[%s2347_s3 + $0x28] sm:$0xff]   ;;  %v1712_v16 = vld [vmem:[%s2348_s4 + $0x50] ss:$8 sps:$4 sm:$0xff]  }
  0x6f   : > { %482 = vadd.xlane.f32.xlu0 %v481_v9  ;;  %1565 = vmatprep.subr.bf16.mxu0 %v1920_v6  ;;  %v1713_v17 = vld [vmem:[%s2348_s4 + $0x44] ss:$8 sps:$4 sm:$0xff]   ;;  %v1716_v19 = vld [vmem:[%s2348_s4 + $0x40] ss:$8 sps:$4 sm:$0xff]   ;;  %v1717_v20 = vld [vmem:[%s2348_s4 + $0x34] ss:$8 sps:$4 sm:$0xff]  }
  0x70   : > { %693 = vmatprep.subr.bf16.mxu1 %v1705_v11  ;;  %v1715_v18 = vld [vmem:[%s2347_s3 + $0x20] sm:$0xff]   ;;  %v1719_v21 = vld [vmem:[%s2347_s3 + $0x18] sm:$0xff]   ;;  %1579 = vmatprep.mubr.msk.bf16.mxu0 %vm1921_vm1, %v1920_v6  ;;  %v1723_v25 = vld [vmem:[%s2347_s3 + $0x10] sm:$0xff]  }
  0x71   : > { %v1720_v22 = vld [vmem:[%s2348_s4 + $0x30] ss:$8 sps:$4 sm:$0xff]   ;;  %v1721_v23 = vld [vmem:[%s2348_s4 + $0x24] ss:$8 sps:$4 sm:$0xff]   ;;  %723 = vmatprep.mubr.bf16.mxu1 %v1922_v24  ;;  %v1724_v26 = vld [vmem:[%s2348_s4 + $0x20] ss:$8 sps:$4 sm:$0xff]  }
  0x72   : > { %1566 = vmatpush3.bf16.msra.mxu0 %v1707_v12  ;;  %694 = vmatpush1.bf16.msra.mxu1 %v1708_v13  ;;  %v1725_v27 = vld [vmem:[%s2348_s4 + $0x14] ss:$8 sps:$4 sm:$0xff]   ;;  %v1727_v28 = vld [vmem:[%s2347_s3 + $0x8] sm:$0xff]   ;;  %v1728_v29 = vld [vmem:[%s2348_s4 + $0x10] ss:$8 sps:$4 sm:$0xff]  }
  0x73   : > { %1567 = vmatprep.subr.bf16.mxu0 %v1920_v6  ;;  %695 = vmatprep.subr.bf16.mxu1 %v1709_v14  ;;  %v1729_v30 = vld [vmem:[%s2348_s4 + $0x4] ss:$8 sps:$4 sm:$0xff]   ;;  %v1732_v32 = vld [vmem:[%s2348_s4] ss:$8 sps:$4 sm:$0xff]  }
  0x74   : > { %v1731_v31 = vld [vmem:[%s2347_s3] sm:$0xff]  }
  0x75   : > { %v478_v37 = vld [vmem:[%s2352_s8] sm:$0x1] }
  0x76   : > { %1568 = vmatpush3.bf16.msra.mxu0 %v1711_v15  ;;  %696 = vmatpush1.bf16.msra.mxu1 %v1712_v16 }
  0x77   : > { %1569 = vmatprep.subr.bf16.mxu0 %v1920_v6  ;;  %697 = vmatprep.subr.bf16.mxu1 %v1713_v17 }
  0x7a   : > { %1570 = vmatpush3.bf16.msra.mxu0 %v1715_v18  ;;  %698 = vmatpush1.bf16.msra.mxu1 %v1716_v19 }
  0x7b   : > { %1571 = vmatprep.subr.bf16.mxu0 %v1920_v6  ;;  %699 = vmatprep.subr.bf16.mxu1 %v1717_v20 }
  0x7e   : > { %1572 = vmatpush3.bf16.msra.mxu0 %v1719_v21  ;;  %700 = vmatpush1.bf16.msra.mxu1 %v1720_v22 }
  0x7f   : > { %1573 = vmatprep.subr.bf16.mxu0 %v1920_v6  ;;  %701 = vmatprep.subr.bf16.mxu1 %v1721_v23 }
  0x82   : > { %1574 = vmatpush3.bf16.msra.mxu0 %v1723_v25  ;;  %702 = vmatpush1.bf16.msra.mxu1 %v1724_v26 }
  0x83   : > { %1575 = vmatprep.subr.bf16.mxu0 %v1920_v6  ;;  %703 = vmatprep.subr.bf16.mxu1 %v1725_v27 }
  0x86   : > { %1576 = vmatpush3.bf16.msra.mxu0 %v1727_v28  ;;  %704 = vmatpush1.bf16.msra.mxu1 %v1728_v29 }
  0x87   : > { %1577 = vmatprep.subr.bf16.mxu0 %v1920_v6  ;;  %705 = vmatprep.subr.bf16.mxu1 %v1729_v30 }
  0x8a   : > { %1578 = vmatpush3.bf16.msra.mxu0 %v1731_v31  ;;  %706 = vmatpush1.bf16.msra.mxu1 %v1732_v32 }
  0xf8   : > { %v483_v33 = vpop.xlane.xlu0 %482 }
  0xf9   : > { %v485_v34 = vmul.f32 0.0078125, %v483_v33 }
  0xfb   : > { %v486_v35 = vadd.f32 1e-06, %v485_v34 }
  0xfd   : > { %1733 = vrsqrt.f32 %v486_v35 }
 0x10a   : > { %v1734_v36 = vpop.eup %1733 }
 0x10b   : > { %v488_v38 = vmul.f32 %v1734_v36, %v2179_v4 }
 0x10d   : > { %v489_v39 = vmul.f32 %v488_v38, %v478_v37 }
 0x10f   : > { %v490_v40 = vpack.c.bf16 %v489_v39, %v489_v39 }
 0x111   : > { %1580 = vmatmul.mubr.bf16.vlgmr.msra.gmra.mxu0 %v490_v40  ;;  %724 = vmatmul.mubr.bf16.vlgmr.msra.gmra.mxu1 %v490_v40 }
 0x1d1   : > { %v589_v41 = vpop.f32.mrf.mxu0  ;;  %v725_v42 = vpop.f32.mrf.mxu1 }
 0x1d3   : > { %v1581_v43 = vpop.f32.mrf.mxu0  ;;  %v727_v44 = vpop.f32.mrf.mxu1 }
 0x1d5   : > { %v592_v45 = vpop.f32.mrf.mxu0  ;;  %v729_v46 = vpop.f32.mrf.mxu1 }
 0x1d7   : > { %v1582_v47 = vpop.f32.mrf.mxu0  ;;  %v730_v48 = vpop.f32.mrf.mxu1 }
 0x1d8   : > { %1893 = dma.done.wait [#allocation6], 512 }
 0x1d9   : > { %1894 = vsyncadd [#allocation6], 4294966784  ;;  %v742_v49 = vlaneseq  ;;  %s758_s20 = sshra.s32 %s2162_s18, 3  ;;  %v1923_v50 = vmov 1966171168   ;;  %s761_s26 = sand.u32 7, %s2162_s18  ;;  %v738_v53 = vcombine.low %v725_v42, %v727_v44 }
 0x1da   : > { %v740_v51 = vunpack.c.l.s4 %v1923_v50  ;;  %s1531_s13 = sshll.u32 %s758_s20, 4  ;;  %s768_s16 = sshrl.u32 %s2162_s18, 3 }
 0x1db   : > { %v743_v52 = vshrl.u32 %v742_v49, 7  ;;  %s764_s15 = sadd.s32 %s1531_s13, %s761_s26  ;;  %vm756_vm2 = vcmp.lt.s32.totalorder %v742_v49, 256  ;;  %s1489_s28 = sshll.u32 %s768_s16, 4 }
 0x1dc   : > { %v741_v54 = vunpack.c.0.s8 %v740_v51  ;;  %s765_s30 = scalar_lea.vmem [#allocation2], %s764_s15  ;;  %s771_s14 = sadd.s32 %s1489_s28, %s761_s26 }
 0x1dd   : > { %s773_s25 = scalar_lea.vmem %s2356_s12, %s771_s14  ;;  %s772_s0 = scalar_lea.vmem [#allocation2], %s771_s14 }
 0x1de   : > { %v744_v55 = vsub.s32 %v741_v54, %v743_v52 }
 0x1e0   : > { %v745_v56 = vrot.slane %v738_v53, %v744_v55 }
 0x1e2   : > { %v752_v57 = vrot.slane %v745_v56, %v744_v55 }
 0x1e4   : > { %766 = vst.msk [vmem:[%s765_s30] ss:$8 sm:$0x3] %vm756_vm2, %v752_v57 }
 0x1eb   : > { %v793_v58 = vld [vmem:[%s772_s0] sm:$0x1]  ;;  %v795_v59 = vld [vmem:[%s772_s0 + $0x8] sm:$0x1] }
 0x1ec   : > { %794 = vst [vmem:[%s773_s25] sm:$0x1] %v793_v58  ;;  %796 = vst [vmem:[%s773_s25 + $0x8] sm:$0x1] %v795_v59 }
 0x1ed   : > { %824 = vsyncadd [#allocation6 + $0x1], 32  ;;  %1583 = vmatprep.subr.bf16.mxu1 %v1920_v6  ;;  %v825_v60 = vld [vmem:[#allocation2] sm:$0xff]  ;;  %v826_v61 = vld [vmem:[#allocation2 + $0x10] sm:$0xff]  ;;  %1585 = vmatprep.mubr.msk.bf16.mxu1 %vm1921_vm1, %v1920_v6  ;;  %1059 = vst [vmem:[#allocation5] sm:$0x1] %v1920_v6  ;;  %v831_v63 = vpack.c.bf16 %v589_v41, %v589_v41  ;;  %v875_v1 = vstv %s2162_s18 }
 0x1ee   : > { %v827_v62 = vpack.c.bf16 %v826_v61, %v825_v60  ;;  %1595 = vmatprep.subr.bf16.mxu0 %v1920_v6  ;;  %1611 = vmatprep.mubr.msk.bf16.mxu0 %vm1921_vm1, %v1920_v6  ;;  %v874_v0 = vand.u32 127, %v742_v49  ;;  %vm878_vm4 = vcmask 122880   ;;  %v828_v16 = vld [vmem:[#allocation2 + $0x8] sm:$0xff]  ;;  %v829_v17 = vld [vmem:[#allocation2 + $0x18] sm:$0xff]  ;;  %vm891_vm5 = vcmask 130048  }
 0x1ef   : > { %v830_v18 = vpack.c.bf16 %v829_v17, %v828_v16  ;;  %v1735_v19 = vld [vmem:[#allocation8 + $0x38] sm:$0xff]   ;;  %v1736_v20 = vld [vmem:[#allocation8 + $0x30] sm:$0xff]   ;;  %v1737_v21 = vld [vmem:[#allocation8 + $0x28] sm:$0xff]   ;;  %vm1054_vm6 = vsmask.f32 256 }
 0x1f0   : > { %1584 = vmatpush3.bf16.xpose.msra.mxu1 %v827_v62  ;;  %vm876_vm3 = vcmp.le.s32.totalorder %v874_v0, %v875_v1  ;;  %1596 = vmatpush3.bf16.msra.mxu0 %v1735_v19  ;;  %v1738_v22 = vld [vmem:[#allocation8 + $0x20] sm:$0xff]   ;;  %v1739_v23 = vld [vmem:[#allocation8 + $0x18] sm:$0xff]   ;;  %v1740_v24 = vld [vmem:[#allocation8 + $0x10] sm:$0xff]  }
 0x1f1   : > { %1589 = vmatprep.subr.bf16.mxu1 %v1920_v6  ;;  %1597 = vmatprep.subr.bf16.mxu0 %v1920_v6  ;;  %v1741_v25 = vld [vmem:[#allocation8 + $0x8] sm:$0xff]   ;;  %v1742_v30 = vld [vmem:[#allocation8] sm:$0xff]   ;;  %v1042_v46 = vld [vmem:[%s2353_s9] sm:$0x1] }
 0x1f2   : > { %vm1055_vm7 = vmand %vm480_vm0, %vm1054_vm6  ;;  %v1056_v48 = vld [vmem:[#allocation4] sm:$0x1] }
 0x1f4   : > { %1598 = vmatpush3.bf16.msra.mxu0 %v1736_v20 }
 0x1f5   : > { %1599 = vmatprep.subr.bf16.mxu0 %v1920_v6 }
 0x1f7   : > { %1586 = vmatmul.mubr.bf16.vlgmr.msra.gmra.mxu1 %v831_v63 }
 0x1f8   : > { %1591 = vmatprep.mubr.msk.bf16.mxu1 %vm1921_vm1, %v1920_v6  ;;  %1590 = vmatpush3.bf16.msra.mxu1 %v830_v18 }
 0x1f9   : > { %1600 = vmatpush3.bf16.msra.mxu0 %v1737_v21 }
 0x1fa   : > { %1601 = vmatprep.subr.bf16.mxu0 %v1920_v6 }
 0x1fd   : > { %1602 = vmatpush3.bf16.msra.mxu0 %v1738_v22 }
 0x1fe   : > { %1603 = vmatprep.subr.bf16.mxu0 %v1920_v6 }
 0x201   : > { %1604 = vmatpush3.bf16.msra.mxu0 %v1739_v23 }
 0x202   : > { %1605 = vmatprep.subr.bf16.mxu0 %v1920_v6 }
 0x205   : > { %1606 = vmatpush3.bf16.msra.mxu0 %v1740_v24 }
 0x206   : > { %1607 = vmatprep.subr.bf16.mxu0 %v1920_v6 }
 0x209   : > { %1608 = vmatpush3.bf16.msra.mxu0 %v1741_v25 }
 0x20a   : > { %1609 = vmatprep.subr.bf16.mxu0 %v1920_v6 }
 0x20d   : > { %1610 = vmatpush3.bf16.msra.mxu0 %v1742_v30 }
 0x2b7   : > { %v866_v2 = vpop.f32.mrf.mxu1 }
 0x2b8   : > { %v872_v3 = vmul.f32 0.088388346, %v866_v2 }
 0x2b9   : > { %v1587_v5 = vpop.f32.mrf.mxu1 }
 0x2ba   : > { %v877_v7 = vsel %vm876_vm3, %v872_v3, -1e+30 }
 0x2bb   : > { %v869_v8 = vpop.f32.mrf.mxu1  ;;  %v879_v9 = vsel %vm878_vm4, %v877_v7, -inf }
 0x2bc   : > { %880 = vmax.xlane.f32.xlu0 %v879_v9 }
 0x2bd   : > { %v1588_v10 = vpop.f32.mrf.mxu1 }
 0x345   : > { %v881_v11 = vpop.xlane.xlu0 %880 }
 0x346   : > { %v882_v12 = vsub.f32 %v877_v7, %v881_v11 }
 0x348   : > { %v883_v13 = vmul.f32 1.442695, %v882_v12 }
 0x34a   : > { %1743 = vpow2.f32 %v883_v13 }
 0x357   : > { %v1744_v14 = vpop.eup %1743 }
 0x358   : > { %v885_v15 = vsel %vm878_vm4, %v1744_v14, 0.0 }
 0x359   : > { %886 = vadd.xlane.f32.xlu0 %v885_v15 }
 0x3e2   : > { %v887_v26 = vpop.xlane.xlu0 %886 }
 0x3e3   : > { %1745 = vrcp.f32 %v887_v26 }
 0x3f0   : > { %v1746_v27 = vpop.eup %1745 }
 0x3f1   : > { %v889_v28 = vmul.f32 %v1746_v27, %v1744_v14 }
 0x3f3   : > { %v890_v29 = vpack.c.bf16 %v889_v28, %v889_v28 }
 0x3f5   : > { %1592 = vmatmul.mubr.msk.bf16.vlgmr.msra.gmra.mxu1 %vm891_vm5, %v890_v29 }
 0x4b5   : > { %v929_v31 = vpop.f32.mrf.mxu1 }
 0x4b6   : > { %v935_v32 = vpack.c.bf16 %v929_v31, %v929_v31 }
 0x4b7   : > { %v1593_v33 = vpop.f32.mrf.mxu1 }
 0x4b8   : > { %1612 = vmatmul.mubr.bf16.vlgmr.msra.gmra.mxu0 %v935_v32 }
 0x4b9   : > { %v932_v34 = vpop.f32.mrf.mxu1 }
 0x4bb   : > { %v1594_v35 = vpop.f32.mrf.mxu1 }
 0x578   : > { %v1034_v36 = vpop.f32.mrf.mxu0 }
 0x579   : > { %v1040_v37 = vadd.f32 %v1034_v36, %v2179_v4 }
 0x57a   : > { %v1613_v38 = vpop.f32.mrf.mxu0 }
 0x57b   : > { %1041 = vst [vmem:[#allocation3] sm:$0x1] %v1040_v37  ;;  %v1043_v6 = vmul.f32 %v1040_v37, %v1040_v37 }
 0x57c   : > { %v1037_v39 = vpop.f32.mrf.mxu0 }
 0x57d   : > { %v1044_v40 = vsel %vm480_vm0, %v1043_v6, 0.0 }
 0x57e   : > { %1045 = vadd.xlane.f32.xlu1 %v1044_v40  ;;  %v1614_v41 = vpop.f32.mrf.mxu0 }
 0x607   : > { %v1046_v42 = vpop.xlane.xlu1 %1045 }
 0x608   : > { %v1047_v43 = vmul.f32 0.0078125, %v1046_v42 }
 0x60a   : > { %v1048_v44 = vadd.f32 1e-06, %v1047_v43 }
 0x60c   : > { %1747 = vrsqrt.f32 %v1048_v44 }
 0x619   : > { %v1748_v45 = vpop.eup %1747 }
 0x61a   : > { %v1050_v47 = vmul.f32 %v1748_v45, %v1040_v37 }
 0x61c   : > { %v1051_v4 = vmul.f32 %v1050_v47, %v1042_v46 }
 0x61e   : > { %v1052_v49 = vpack.c.bf16 %v1051_v4, %v1051_v4 }
 0x620   : > { %v1057_v50 = vsel %vm1055_vm7, %v1052_v49, %v1056_v48 }
 0x621   : > { %1058 = vst [vmem:[#allocation4] sm:$0x1] %v1057_v50 }
 0x622   : > { %1895 = dma.done.wait [#allocation6 + $0x1], 32 }
 0x623   : > { %1896 = vsyncadd [#allocation6 + $0x1], 4294967264 }
 0x624 PF: > { %v1749_v51 = vld [vmem:[%s2152_s27 + $0x74] ss:$8 sps:$4 sm:$0xff]   ;;  %v1751_v52 = vld [vmem:[%s2152_s27 + $0x70] ss:$8 sps:$4 sm:$0xff]   ;;  %v1924_v53 = vmov 0   ;;  %v1925_v8 = vmov 0.0  }
 0x625   : > { %1192 = vmatprep.mubr.bf16.mxu0 %v1924_v53  ;;  %1160 = vmatprep.subr.bf16.mxu0 %v1749_v51  ;;  %v1752_v54 = vld [vmem:[%s2152_s27 + $0x64] ss:$8 sps:$4 sm:$0xff]   ;;  %v1754_v55 = vld [vmem:[%s2152_s27 + $0x60] ss:$8 sps:$4 sm:$0xff]   ;;  %v1755_v56 = vld [vmem:[%s2152_s27 + $0x54] ss:$8 sps:$4 sm:$0xff]  }
 0x626   : > { %1161 = vmatpush1.bf16.msra.mxu0 %v1751_v52  ;;  %v1757_v57 = vld [vmem:[%s2152_s27 + $0x50] ss:$8 sps:$4 sm:$0xff]   ;;  %v1758_v58 = vld [vmem:[%s2152_s27 + $0x44] ss:$8 sps:$4 sm:$0xff]   ;;  %v1760_v59 = vld [vmem:[%s2152_s27 + $0x40] ss:$8 sps:$4 sm:$0xff]   ;;  %1615 = vmatprep.subr.bf16.mxu1 %v1925_v8 }
 0x627   : > { %1162 = vmatprep.subr.bf16.mxu0 %v1752_v54  ;;  %v1761_v60 = vld [vmem:[%s2152_s27 + $0x34] ss:$8 sps:$4 sm:$0xff]   ;;  %v1763_v61 = vld [vmem:[%s2152_s27 + $0x30] ss:$8 sps:$4 sm:$0xff]   ;;  %v1764_v62 = vld [vmem:[%s2152_s27 + $0x24] ss:$8 sps:$4 sm:$0xff]  }
 0x628   : > { %v1766_v63 = vld [vmem:[%s2152_s27 + $0x20] ss:$8 sps:$4 sm:$0xff]   ;;  %v1767_v0 = vld [vmem:[%s2152_s27 + $0x14] ss:$8 sps:$4 sm:$0xff]   ;;  %v1769_v1 = vld [vmem:[%s2152_s27 + $0x10] ss:$8 sps:$4 sm:$0xff]  }
 0x629   : > { %v1770_v2 = vld [vmem:[%s2152_s27 + $0x4] ss:$8 sps:$4 sm:$0xff]   ;;  %v1772_v3 = vld [vmem:[%s2152_s27] ss:$8 sps:$4 sm:$0xff]   ;;  %v1063_v5 = vld [vmem:[#allocation4] sm:$0x1] }
 0x62a   : > { %1163 = vmatpush1.bf16.msra.mxu0 %v1754_v55  ;;  %v1773_v7 = vld [vmem:[%s2158_s22 + $0x38] sm:$0xff]   ;;  %v1774_v9 = vld [vmem:[%s2158_s22 + $0x30] sm:$0xff]   ;;  %v1775_v10 = vld [vmem:[%s2158_s22 + $0x28] sm:$0xff]   ;;  %vm1926_vm8 = vmmov 0   ;;  %p1524_p13 = scmp.ne.s32.totalorder %s2074_s17, 1 }
 0x62b   : > { %1164 = vmatprep.subr.bf16.mxu0 %v1755_v56  ;;  %1616 = vmatpush3.bf16.msra.mxu1 %v1773_v7  ;;  %v1776_v11 = vld [vmem:[%s2158_s22 + $0x20] sm:$0xff]   ;;  %v1777_v12 = vld [vmem:[%s2158_s22 + $0x18] sm:$0xff]   ;;  %v1778_v13 = vld [vmem:[%s2158_s22 + $0x10] sm:$0xff]  }
 0x62c   : > { %1617 = vmatprep.subr.bf16.mxu1 %v1925_v8  ;;  %v1779_v14 = vld [vmem:[%s2158_s22 + $0x8] sm:$0xff]   ;;  %v1780_v15 = vld [vmem:[%s2158_s22] sm:$0xff]   ;;  %1631 = vmatprep.mubr.msk.bf16.mxu1 %vm1926_vm8, %v1925_v8  ;;  %v1210_v27 = vld [vmem:[#allocation5] sm:$0x1] }
 0x62e   : > { %1165 = vmatpush1.bf16.msra.mxu0 %v1757_v57 }
 0x62f   : > { %1166 = vmatprep.subr.bf16.mxu0 %v1758_v58  ;;  %1618 = vmatpush3.bf16.msra.mxu1 %v1774_v9 }
 0x630   : > { %1619 = vmatprep.subr.bf16.mxu1 %v1925_v8 }
 0x632   : > { %1167 = vmatpush1.bf16.msra.mxu0 %v1760_v59 }
 0x633   : > { %1168 = vmatprep.subr.bf16.mxu0 %v1761_v60  ;;  %1620 = vmatpush3.bf16.msra.mxu1 %v1775_v10 }
 0x634   : > { %1621 = vmatprep.subr.bf16.mxu1 %v1925_v8 }
 0x636   : > { %1169 = vmatpush1.bf16.msra.mxu0 %v1763_v61 }
 0x637   : > { %1170 = vmatprep.subr.bf16.mxu0 %v1764_v62  ;;  %1622 = vmatpush3.bf16.msra.mxu1 %v1776_v11 }
 0x638   : > { %1623 = vmatprep.subr.bf16.mxu1 %v1925_v8 }
 0x63a   : > { %1171 = vmatpush1.bf16.msra.mxu0 %v1766_v63 }
 0x63b   : > { %1172 = vmatprep.subr.bf16.mxu0 %v1767_v0  ;;  %1624 = vmatpush3.bf16.msra.mxu1 %v1777_v12 }
 0x63c   : > { %1625 = vmatprep.subr.bf16.mxu1 %v1925_v8 }
 0x63e   : > { %1173 = vmatpush1.bf16.msra.mxu0 %v1769_v1 }
 0x63f   : > { %1174 = vmatprep.subr.bf16.mxu0 %v1770_v2  ;;  %1626 = vmatpush3.bf16.msra.mxu1 %v1778_v13 }
 0x640   : > { %1627 = vmatprep.subr.bf16.mxu1 %v1925_v8 }
 0x642   : > { %1175 = vmatpush1.bf16.msra.mxu0 %v1772_v3 }
 0x643   : > { %1628 = vmatpush3.bf16.msra.mxu1 %v1779_v14 }
 0x644   : > { %1629 = vmatprep.subr.bf16.mxu1 %v1925_v8 }
 0x645   : > { %1193 = vmatmul.mubr.bf16.vlgmr.msra.gmra.mxu0 %v1063_v5 }
 0x647   : > { %1630 = vmatpush3.bf16.msra.mxu1 %v1780_v15 }
 0x705   : > { %v1194_v16 = vpop.f32.mrf.mxu0 }
 0x706   : > { %v1515_v17 = vmul.f32 -1.442695, %v1194_v16 }
 0x707   : > { %v1196_v18 = vpop.f32.mrf.mxu0 }
 0x708   : > { %1781 = vpow2.f32 %v1515_v17 }
 0x709   : > { %v1198_v19 = vpop.f32.mrf.mxu0 }
 0x70b   : > { %v1199_v20 = vpop.f32.mrf.mxu0 }
 0x715   : > { %v1782_v21 = vpop.eup %1781 }
 0x716   : > { %v1204_v22 = vadd.f32 1.0, %v1782_v21 }
 0x718   : > { %1783 = vrcp.f32 %v1204_v22 }
 0x725   : > { %v1784_v23 = vpop.eup %1783 }
 0x726   : > { %v1207_v24 = vmul.f32 %v1784_v23, %v1194_v16 }
 0x728   : > { %v1208_v25 = vmul.f32 %v1207_v24, %v1196_v18 }
 0x72a   : > { %v1209_v26 = vpack.c.bf16 %v1208_v25, %v1208_v25 }
 0x72c   : > { %1632 = vmatmul.mubr.bf16.vlgmr.msra.gmra.mxu1 %v1209_v26 }
 0x7ec   : > { %v1309_v28 = vpop.f32.mrf.mxu1 }
 0x7ed   : > { %v1315_v29 = vadd.f32 %v1309_v28, %v1210_v27 }
 0x7ee   : > { %v1633_v30 = vpop.f32.mrf.mxu1  ;;  %1320 = sbr.rel (%p1524_p13) target bundleno = 2205 (0x89d), region = 144 }
 0x7ef   : > { %1316 = vst [vmem:[#allocation5] sm:$0x1] %v1315_v29 }
 0x7f0   : > { %v1312_v31 = vpop.f32.mrf.mxu1 }
 0x7f2   : > { %v1634_v32 = vpop.f32.mrf.mxu1 }
 0x7f3   : > { %v1321_v33 = vld [vmem:[#allocation3] sm:$0x1]  ;;  %vm1326_vm9 = vcmask 1040384  }
 0x7f4   : > { %v1324_v41 = vld [vmem:[%s2354_s10] sm:$0x1] }
 0x7f6   : > { %v1322_v34 = vld [vmem:[#allocation5] sm:$0x1] }
 0x7f7   : > { %v1323_v35 = vadd.f32 %v1322_v34, %v1321_v33 }
 0x7f9   : > { %v1325_v36 = vmul.f32 %v1323_v35, %v1323_v35 }
 0x7fb   : > { %v1327_v37 = vsel %vm1326_vm9, %v1325_v36, 0.0 }
 0x7fc   : > { %1328 = vadd.xlane.f32.xlu0 %v1327_v37 }
 0x885   : > { %v1329_v38 = vpop.xlane.xlu0 %1328 }
 0x886   : > { %v1331_v6 = vmul.f32 0.0078125, %v1329_v38 }
 0x888   : > { %v1332_v39 = vadd.f32 1e-06, %v1331_v6 }
 0x88a   : > { %1785 = vrsqrt.f32 %v1332_v39 }
 0x897   : > { %v1786_v40 = vpop.eup %1785 }
 0x898   : > { %v1334_v42 = vmul.f32 %v1786_v40, %v1323_v35 }
 0x89a   : > { %v1335_v43 = vmul.f32 %v1334_v42, %v1324_v41 }
 0x89c   : > { %1336 = vst [vmem:[%s2355_s11] sm:$0x1] %v1335_v43 }
 0x89d PF: > { %s2375_s26 = sld [smem:[#allocation20_spill]]  ;;  %s2378_s23 = smov %s1903_s24 }
 0x89e   : > { %s2376_s6 = sld [smem:[#allocation19_spill]] }
 0x89f   : > { %s2377_s25 = sld [smem:[#allocation21_spill]] }
 0x8a3   : > { %p25_p1 = scmp.ge.s32.totalorder %s2375_s26, 4  }
 0x8a4   : > { %s2379_s24 = smov %s2376_s6 }
 0x8a5   :  { %27 = sbr.rel (!%p25_p1) target bundleno = 7 (0x7), region = 207 }
 0x8aa   :  { %1348 = vsyncpa [#allocation9], 1 }
 0x8ab   :  { %1350 = vsyncpa [#allocation9 + $0x1], 1 }
 0x8ac   :  { %1351 = vsyncpa [#allocation11], 1 }
 0x8ad   :  { %1353 = vsyncpa [#allocation11 + $0x1], 1 }
 0x8ae   :  { %1354 = vsyncmov [#allocation6] }
 0x8b1   :  { %s1355_s20 = vpop.sfrf %1354 }
 0x8b2   :  { %p1527_p9 = scmp.ne.s32.totalorder %s1355_s20, 0 }
 0x8b4   :  { %1359 = shalt.err (%p1527_p9)  }
 0x8b5   :  { %1361 = vsyncmov [#allocation6 + $0x1] }
 0x8b8   :  { %s1362_s13 = vpop.sfrf %1361 }
 0x8b9   :  { %p1528_p11 = scmp.ne.s32.totalorder %s1362_s13, 0 }
 0x8bb   :  { %1366 = shalt.err (%p1528_p11)  }

</bundles_post_ra>
